<compile_context>
chip_gen: v6e
topology: v6e:2x2x1
jax: 0.10.0
libtpu: 0.0.40
codegen_flags: <defaults>
</compile_context>

<pallas_src>
import functools
import math

import jax
import jax.numpy as jnp
from jax.experimental import pallas as pl
from jax.experimental.pallas import tpu as pltpu


def _round_up(x, m):
    return (x + m - 1) // m * m


def _row_tile(b):
    # second-minor block dims must be a multiple of the native tiling or the
    # full dim; 32/16 are safe for f32 and bf16, otherwise take the whole batch.
    for t in (32, 16):
        if b % t == 0:
            return t
    return b


# ----------------------------- Pallas kernels ------------------------------

def _conv_encoder_kernel(x_ref, w1_ref, b1_ref, w2_ref, b2_ref, o_ref, *,
                         wp, lseg, tb):
    """Fused PixelEncoder convs.

    x_ref  : (1, 4, C, Lx) bf16   phase-decomposed obs, lanes = tb images of
                                  `lseg` pixels each (+ zero margin).
    w1_ref : (9, F, C)  bf16      conv1 taps (already scaled by 1/255).
    b1_ref : (F, 1)     f32
    w2_ref : (9, F, F)  bf16      conv2 taps.
    b2_ref : (F, 1)     f32
    o_ref  : (tb, F, lseg) bf16   per-image conv2 feature slabs (lane-dense).
    """
    l2 = tb * lseg              # conv2 output extent (lanes)
    l1 = l2 + 2 * wp + 2        # conv1 extent (margin needed by conv2 taps)

    # conv1: 3x3 stride-2 conv as 9 lane-shifted matmuls over the phase planes.
    acc1 = None
    for t in range(9):
        i, j = divmod(t, 3)
        phase = (i % 2) * 2 + (j % 2)
        off = (i // 2) * wp + (j // 2)
        xs = x_ref[0, phase, :, off:off + l1]                    # (C, l1) bf16
        part = jnp.dot(w1_ref[t], xs, preferred_element_type=jnp.float32)
        acc1 = part if acc1 is None else acc1 + part
    h1 = jnp.maximum(acc1 + b1_ref[...], 0.0).astype(jnp.bfloat16)   # (F, l1)

    # conv2: 3x3 stride-1 conv on conv1's anchored (Hp, Wp) grid.
    acc2 = None
    for t in range(9):
        i, j = divmod(t, 3)
        off = i * wp + j
        part = jnp.dot(w2_ref[t], h1[:, off:off + l2],
                       preferred_element_type=jnp.float32)
        acc2 = part if acc2 is None else acc2 + part
    y = jnp.maximum(acc2 + b2_ref[...], 0.0).astype(o_ref.dtype)      # (F, l2)

    # Split per-image lane segments into output rows (aligned, 128-multiple).
    for t in range(tb):
        o_ref[t, :, :] = y[:, t * lseg:(t + 1) * lseg]


def _mlp_head_kernel(z_ref, wfc_ref, bfc_ref, g_ref, beta_ref,
                     w1_ref, b1_ref, w2_ref, b2_ref, w3_ref, b3_ref,
                     noise_ref, o_ref, *, action_dim, log_std_min,
                     log_std_max):
    """Fused encoder-fc + LayerNorm + trunk + sampling head.

    Matmul operands are bf16 (MXU), all accumulation / elementwise math in f32.
    Output is a packed lane-dense slab: [mu | pi | log_std | log_pi | 0-pad].
    """
    # encoder fc + LayerNorm (output_logits=True -> no tanh)
    h = jnp.dot(z_ref[...], wfc_ref[...], preferred_element_type=jnp.float32)
    h = h + bfc_ref[...]
    mean = jnp.mean(h, axis=-1, keepdims=True)
    var = jnp.mean((h - mean) * (h - mean), axis=-1, keepdims=True)
    feat = (h - mean) * jax.lax.rsqrt(var + 1e-5) * g_ref[...] + beta_ref[...]

    # trunk: Linear -> ReLU -> Linear -> ReLU -> Linear(2A)
    a1 = jnp.dot(feat.astype(jnp.bfloat16), w1_ref[...],
                 preferred_element_type=jnp.float32) + b1_ref[...]
    a1 = jnp.maximum(a1, 0.0)
    a2 = jnp.dot(a1.astype(jnp.bfloat16), w2_ref[...],
                 preferred_element_type=jnp.float32) + b2_ref[...]
    a2 = jnp.maximum(a2, 0.0)
    out = jnp.dot(a2.astype(jnp.bfloat16), w3_ref[...],
                  preferred_element_type=jnp.float32) + b3_ref[...]

    a = action_dim
    mu = out[:, :a]
    log_std = jnp.tanh(out[:, a:2 * a])
    log_std = log_std_min + 0.5 * (log_std_max - log_std_min) * (log_std + 1.0)

    std = jnp.exp(log_std)
    noise = noise_ref[...]
    pi = mu + noise * std

    # gaussian_logprob
    log_pi = jnp.sum(-0.5 * noise * noise - log_std, axis=-1, keepdims=True)
    log_pi = log_pi - 0.5 * math.log(2.0 * math.pi) * a

    # squash
    mu_t = jnp.tanh(mu)
    pi_t = jnp.tanh(pi)
    log_pi = log_pi - jnp.sum(
        jnp.log(jnp.maximum(1.0 - pi_t * pi_t, 0.0) + 1e-6),
        axis=-1, keepdims=True)

    o_ref[...] = jnp.zeros_like(o_ref)
    o_ref[:, 0:a] = mu_t
    o_ref[:, a:2 * a] = pi_t
    o_ref[:, 2 * a:3 * a] = log_std
    o_ref[:, 3 * a:3 * a + 1] = log_pi


# ------------------------------ kernel wrappers -----------------------------

_COMPILER_PARAMS = pltpu.CompilerParams(
    dimension_semantics=("parallel",),
    vmem_limit_bytes=48 * 1024 * 1024,   # above v5e/v6e scoped default, < v7x 64 MiB
)


def _conv_encoder_call(xph, p, geo):
    nb, _, c, lx = xph.shape
    f = p["w2taps"].shape[1]
    tb, lseg, wp = geo["tb"], geo["lseg"], geo["wp"]
    batch = nb * tb
    kernel = functools.partial(_conv_encoder_kernel, wp=wp, lseg=lseg, tb=tb)
    return pl.pallas_call(
        kernel,
        out_shape=jax.ShapeDtypeStruct((batch, f, lseg), jnp.bfloat16),
        grid=(nb,),
        in_specs=[
            pl.BlockSpec((1, 4, c, lx), lambda i: (i, 0, 0, 0)),
            pl.BlockSpec(p["w1taps"].shape, lambda i: (0, 0, 0)),
            pl.BlockSpec(p["b1c"].shape, lambda i: (0, 0)),
            pl.BlockSpec(p["w2taps"].shape, lambda i: (0, 0, 0)),
            pl.BlockSpec(p["b2c"].shape, lambda i: (0, 0)),
        ],
        out_specs=pl.BlockSpec((tb, f, lseg), lambda i: (i, 0, 0)),
        compiler_params=_COMPILER_PARAMS,
    )(xph, p["w1taps"], p["b1c"], p["w2taps"], p["b2c"])


def _mlp_head_call(z, noise, p, action_dim, log_std_min, log_std_max):
    batch, d = z.shape
    out_width = _round_up(3 * action_dim + 1, 128)
    tb = _row_tile(batch)
    kernel = functools.partial(
        _mlp_head_kernel,
        action_dim=int(action_dim),
        log_std_min=float(log_std_min),
        log_std_max=float(log_std_max),
    )

    def full(shape):
        return pl.BlockSpec(shape, lambda i, _s=shape: (0,) * len(_s))

    packed = pl.pallas_call(
        kernel,
        out_shape=jax.ShapeDtypeStruct((batch, out_width), jnp.float32),
        grid=(batch // tb,),
        in_specs=[
            pl.BlockSpec((tb, d), lambda i: (i, 0)),
            full(p["wfc"].shape), full(p["bfc"].shape),
            full(p["g"].shape), full(p["beta"].shape),
            full(p["w1t"].shape), full(p["b1"].shape),
            full(p["w2t"].shape), full(p["b2"].shape),
            full(p["w3t"].shape), full(p["b3"].shape),
            pl.BlockSpec((tb, action_dim), lambda i: (i, 0)),
        ],
        out_specs=pl.BlockSpec((tb, out_width), lambda i: (i, 0)),
        compiler_params=_COMPILER_PARAMS,
    )(z, p["wfc"], p["bfc"], p["g"], p["beta"], p["w1t"], p["b1"],
      p["w2t"], p["b2"], p["w3t"], p["b3"], noise)

    a = action_dim
    mu = packed[:, :a]
    pi = packed[:, a:2 * a]
    log_std = packed[:, 2 * a:3 * a]
    log_pi = packed[:, 3 * a:3 * a + 1]
    return mu, pi, log_pi, log_std


# ------------------------------- glue / init --------------------------------

def _orthogonal(key, rows, cols, gain=1.0):
    """Orthogonal init (same semantics as nn.init.orthogonal_, not bitwise)."""
    big, small = max(rows, cols), min(rows, cols)
    a = jax.random.normal(key, (big, small), dtype=jnp.float32)
    q, r = jnp.linalg.qr(a)
    q = q * jnp.sign(jnp.diag(r))[None, :]
    if rows < cols:
        q = q.T
    return (gain * q).astype(jnp.float32)


def _conv_weight(key, c_out, c_in, k):
    """weight_init for Conv2d: zeros everywhere, orthogonal*gain('relu') at center."""
    w = jnp.zeros((c_out, c_in, k, k), dtype=jnp.float32)
    center = _orthogonal(key, c_out, c_in, gain=math.sqrt(2.0))
    return w.at[:, :, k // 2, k // 2].set(center)


def make_params(key, obs_shape, action_dim, hidden_dim, feat_dim, num_filters):
    c, hh, ww = obs_shape
    h1 = (hh - 3) // 2 + 1
    w1 = (ww - 3) // 2 + 1
    h2, w2 = h1 - 2, w1 - 2
    flat = num_filters * h2 * w2
    ks = jax.random.split(key, 8)
    return {
        "conv1_w": _conv_weight(ks[0], num_filters, c, 3),
        "conv1_b": jnp.zeros((num_filters,), jnp.float32),
        "conv2_w": _conv_weight(ks[1], num_filters, num_filters, 3),
        "conv2_b": jnp.zeros((num_filters,), jnp.float32),
        "fc_w": _orthogonal(ks[2], feat_dim, flat),
        "fc_b": jnp.zeros((feat_dim,), jnp.float32),
        "ln_g": jnp.ones((feat_dim,), jnp.float32),
        "ln_b": jnp.zeros((feat_dim,), jnp.float32),
        "w1": _orthogonal(ks[3], hidden_dim, feat_dim),
        "b1": jnp.zeros((hidden_dim,), jnp.float32),
        "w2": _orthogonal(ks[4], hidden_dim, hidden_dim),
        "b2": jnp.zeros((hidden_dim,), jnp.float32),
        "w3": _orthogonal(ks[5], 2 * action_dim, hidden_dim),
        "b3": jnp.zeros((2 * action_dim,), jnp.float32),
    }


def prepare_params(raw, obs_shape, batch):
    """One-time layout plumbing: tap matrices, 1/255 folding, fc-weight
    permutation / zero-expansion, bf16 casts, transposed trunk weights."""
    c, hh, ww = obs_shape
    assert hh % 2 == 0 and ww % 2 == 0, "even spatial dims expected"
    hp, wp = hh // 2, ww // 2
    ho1, wo1 = hp - 1, wp - 1
    ho2, wo2 = ho1 - 2, wo1 - 2
    assert ho2 >= 1 and wo2 >= 1
    f = raw["conv1_w"].shape[0]
    feat = raw["fc_w"].shape[0]

    lseg = _round_up(hp * wp, 128)          # per-image lane segment (lane-dense)
    margin = _round_up(3 * wp + 3, 128)     # zero margin for the tap shifts
    tb = math.gcd(batch, 8)                 # images per conv grid step
    geo = dict(c=c, hh=hh, ww=ww, hp=hp, wp=wp, ho2=ho2, wo2=wo2,
               lseg=lseg, margin=margin, tb=tb)

    # conv taps; fold the PixelEncoder obs/255 preprocessing into conv1.
    w1 = raw["conv1_w"] / 255.0
    w1taps = jnp.stack([w1[:, :, t // 3, t % 3] for t in range(9)],
                       axis=0).astype(jnp.bfloat16)              # (9, F, C)
    w2taps = jnp.stack([raw["conv2_w"][:, :, t // 3, t % 3] for t in range(9)],
                       axis=0).astype(jnp.bfloat16)              # (9, F, F)

    # fc weight: permute + zero-expand rows so it consumes the kernel's junk-
    # padded (F, lseg) conv2 layout directly (replaces the runtime transpose +
    # flatten of the reference code; junk columns hit all-zero rows).
    wfc = raw["fc_w"].reshape(feat, f, ho2, wo2)
    wfc = jnp.pad(wfc, ((0, 0), (0, 0), (0, hp - ho2), (0, wp - wo2)))
    wfc = wfc.reshape(feat, f, hp * wp)
    wfc = jnp.pad(wfc, ((0, 0), (0, 0), (0, lseg - hp * wp)))
    wfc = wfc.reshape(feat, f * lseg).T.astype(jnp.bfloat16)     # (D, feat)

    p = dict(
        w1taps=w1taps,
        b1c=raw["conv1_b"].reshape(f, 1).astype(jnp.float32),
        w2taps=w2taps,
        b2c=raw["conv2_b"].reshape(f, 1).astype(jnp.float32),
        wfc=wfc,
        bfc=raw["fc_b"].reshape(1, feat).astype(jnp.float32),
        g=raw["ln_g"].reshape(1, feat).astype(jnp.float32),
        beta=raw["ln_b"].reshape(1, feat).astype(jnp.float32),
        w1t=raw["w1"].T.astype(jnp.bfloat16),
        b1=raw["b1"].reshape(1, -1).astype(jnp.float32),
        w2t=raw["w2"].T.astype(jnp.bfloat16),
        b2=raw["b2"].reshape(1, -1).astype(jnp.float32),
        w3t=raw["w3"].T.astype(jnp.bfloat16),
        b3=raw["b3"].reshape(1, -1).astype(jnp.float32),
    )
    return p, geo


def _phase_decompose(obs, geo):
    """obs (B, C, H, W) -> (nb, 4, C, tb*lseg + margin) bf16 phase planes.

    Phase index = (h%2)*2 + (w%2); lanes are tb images of `lseg` pixels each
    (pixel index = (h//2)*Wp + (w//2)), followed by a zero margin.
    This is the only wrapper-side pass over obs (it replaces the old
    NCHW->NHWC transpose and /255 pass)."""
    b, c, hh, ww = obs.shape
    hp, wp = geo["hp"], geo["wp"]
    tb, lseg, margin = geo["tb"], geo["lseg"], geo["margin"]
    nb = b // tb
    x = obs.reshape(nb, tb, c, hp, 2, wp, 2)
    x = jnp.transpose(x, (0, 4, 6, 2, 1, 3, 5))      # (nb, 2, 2, C, tb, hp, wp)
    x = x.reshape(nb, 4, c, tb, hp * wp)
    x = jnp.pad(x, ((0, 0),) * 4 + ((0, lseg - hp * wp),))
    x = x.reshape(nb, 4, c, tb * lseg)
    x = jnp.pad(x, ((0, 0),) * 3 + ((0, margin),))
    return x.astype(jnp.bfloat16)


def actor_forward(prepped, obs, noise, *, geo, log_std_min, log_std_max,
                  action_dim):
    """Equivalent of Actor.forward(obs, compute_pi=True, compute_log_pi=True)."""
    batch = obs.shape[0]
    xph = _phase_decompose(obs.astype(jnp.float32), geo)
    y = _conv_encoder_call(xph, prepped, geo)          # (B, F, lseg) bf16
    # TODO(synk): this is the single remaining HBM round trip between the two
    # fused kernels; the reshape below is a free row-major view.
    z = y.reshape(batch, -1)                           # (B, F*lseg)
    return _mlp_head_call(z, noise, prepped, action_dim,
                          log_std_min, log_std_max)


if __name__ == "__main__":
    # Small shapes consistent with the module.
    batch = 2
    obs_shape = (3, 16, 16)       # (C, H, W), PyTorch NCHW input
    action_dim = 4
    hidden_dim = 32
    feat_dim = 32
    num_filters = 8
    log_std_min, log_std_max = -10.0, 2.0

    key = jax.random.PRNGKey(0)
    k_param, k_obs, k_noise = jax.random.split(key, 3)
    raw = make_params(k_param, obs_shape, action_dim, hidden_dim,
                      feat_dim, num_filters)
    prepped, geo = prepare_params(raw, obs_shape, batch)

    obs = jax.random.uniform(k_obs, (batch,) + obs_shape,
                             minval=0.0, maxval=255.0, dtype=jnp.float32)
    # torch.randn_like(mu) replaced by a deterministic JAX normal fed in.
    noise = jax.random.normal(k_noise, (batch, action_dim), dtype=jnp.float32)

    fwd = jax.jit(functools.partial(
        actor_forward, geo=geo, log_std_min=log_std_min,
        log_std_max=log_std_max, action_dim=action_dim))

    mu, pi, log_pi, log_std = fwd(prepped, obs, noise)
    jax.block_until_ready((mu, pi, log_pi, log_std))

    assert mu.shape == (batch, action_dim)
    assert pi.shape == (batch, action_dim)
    assert log_pi.shape == (batch, 1)
    assert log_std.shape == (batch, action_dim)
    assert bool(jnp.all(jnp.isfinite(mu)))
    assert bool(jnp.all(jnp.isfinite(pi)))
    assert bool(jnp.all(jnp.isfinite(log_pi)))
    assert bool(jnp.all(jnp.isfinite(log_std)))
    print("KERNEL_OK")
</pallas_src>

<mosaic_0001>
module attributes {stable_mosaic.version = 11 : i64} {
  func.func @_conv_encoder_kernel(%arg0: i32, %arg1: memref<1x4x3x384xbf16, #tpu.memory_space<vmem>>, %arg2: memref<9x8x3xbf16, #tpu.memory_space<vmem>>, %arg3: memref<8x1xf32, #tpu.memory_space<vmem>>, %arg4: memref<9x8x8xbf16, #tpu.memory_space<vmem>>, %arg5: memref<8x1xf32, #tpu.memory_space<vmem>>, %arg6: memref<2x8x128xbf16, #tpu.memory_space<vmem>>) attributes {dimension_semantics = [#tpu.dimension_semantics<parallel>], iteration_bounds = array<i64: 1>, scalar_prefetch = 0 : i64, scratch_operands = 0 : i64, tpu.core_type = #tpu.core_type<tc>, window_params = [{transform_indices = @transform_0, window_bounds = array<i64: 1, 4, 3, 384>}, {pipeline_mode = #tpu.pipeline_mode<synchronous>, transform_indices = @transform_1, window_bounds = array<i64: 9, 8, 3>}, {pipeline_mode = #tpu.pipeline_mode<synchronous>, transform_indices = @transform_2, window_bounds = array<i64: 8, 1>}, {pipeline_mode = #tpu.pipeline_mode<synchronous>, transform_indices = @transform_3, window_bounds = array<i64: 9, 8, 8>}, {pipeline_mode = #tpu.pipeline_mode<synchronous>, transform_indices = @transform_4, window_bounds = array<i64: 8, 1>}, {transform_indices = @transform_5, window_bounds = array<i64: 2, 8, 128>}]} {
    %c0 = arith.constant 0 : index
    %c0_0 = arith.constant 0 : index
    %c0_1 = arith.constant 0 : index
    %c0_2 = arith.constant 0 : index
    %0 = vector.load %arg1[%c0, %c0_0, %c0_1, %c0_2] : memref<1x4x3x384xbf16, #tpu.memory_space<vmem>>, vector<1x1x3x274xbf16>
    %1 = vector.shape_cast %0 : vector<1x1x3x274xbf16> to vector<3x274xbf16>
    %c0_3 = arith.constant 0 : index
    %c0_4 = arith.constant 0 : index
    %c0_5 = arith.constant 0 : index
    %2 = vector.load %arg2[%c0_3, %c0_4, %c0_5] : memref<9x8x3xbf16, #tpu.memory_space<vmem>>, vector<1x8x3xbf16>
    %3 = vector.shape_cast %2 : vector<1x8x3xbf16> to vector<8x3xbf16>
    %cst = arith.constant dense<0.000000e+00> : vector<8x274xf32>
    %4 = tpu.matmul %3, %1, %cst {dimension_numbers = #tpu.dot_dimension_numbers<[1], [0], [0], [1], [0, 0, 1, 1], [], []>} : vector<8x3xbf16>, vector<3x274xbf16>, vector<8x274xf32> -> vector<8x274xf32>
    %c0_6 = arith.constant 0 : index
    %c1 = arith.constant 1 : index
    %c0_7 = arith.constant 0 : index
    %c0_8 = arith.constant 0 : index
    %5 = vector.load %arg1[%c0_6, %c1, %c0_7, %c0_8] : memref<1x4x3x384xbf16, #tpu.memory_space<vmem>>, vector<1x1x3x274xbf16>
    %6 = vector.shape_cast %5 : vector<1x1x3x274xbf16> to vector<3x274xbf16>
    %c1_9 = arith.constant 1 : index
    %c0_10 = arith.constant 0 : index
    %c0_11 = arith.constant 0 : index
    %7 = vector.load %arg2[%c1_9, %c0_10, %c0_11] : memref<9x8x3xbf16, #tpu.memory_space<vmem>>, vector<1x8x3xbf16>
    %8 = vector.shape_cast %7 : vector<1x8x3xbf16> to vector<8x3xbf16>
    %cst_12 = arith.constant dense<0.000000e+00> : vector<8x274xf32>
    %9 = tpu.matmul %8, %6, %cst_12 {dimension_numbers = #tpu.dot_dimension_numbers<[1], [0], [0], [1], [0, 0, 1, 1], [], []>} : vector<8x3xbf16>, vector<3x274xbf16>, vector<8x274xf32> -> vector<8x274xf32>
    %10 = arith.addf %4, %9 : vector<8x274xf32>
    %c0_13 = arith.constant 0 : index
    %c0_14 = arith.constant 0 : index
    %c0_15 = arith.constant 0 : index
    %c1_16 = arith.constant 1 : index
    %11 = vector.load %arg1[%c0_13, %c0_14, %c0_15, %c1_16] : memref<1x4x3x384xbf16, #tpu.memory_space<vmem>>, vector<1x1x3x274xbf16>
    %12 = vector.shape_cast %11 : vector<1x1x3x274xbf16> to vector<3x274xbf16>
    %c2 = arith.constant 2 : index
    %c0_17 = arith.constant 0 : index
    %c0_18 = arith.constant 0 : index
    %13 = vector.load %arg2[%c2, %c0_17, %c0_18] : memref<9x8x3xbf16, #tpu.memory_space<vmem>>, vector<1x8x3xbf16>
    %14 = vector.shape_cast %13 : vector<1x8x3xbf16> to vector<8x3xbf16>
    %cst_19 = arith.constant dense<0.000000e+00> : vector<8x274xf32>
    %15 = tpu.matmul %14, %12, %cst_19 {dimension_numbers = #tpu.dot_dimension_numbers<[1], [0], [0], [1], [0, 0, 1, 1], [], []>} : vector<8x3xbf16>, vector<3x274xbf16>, vector<8x274xf32> -> vector<8x274xf32>
    %16 = arith.addf %10, %15 : vector<8x274xf32>
    %c0_20 = arith.constant 0 : index
    %c2_21 = arith.constant 2 : index
    %c0_22 = arith.constant 0 : index
    %c0_23 = arith.constant 0 : index
    %17 = vector.load %arg1[%c0_20, %c2_21, %c0_22, %c0_23] : memref<1x4x3x384xbf16, #tpu.memory_space<vmem>>, vector<1x1x3x274xbf16>
    %18 = vector.shape_cast %17 : vector<1x1x3x274xbf16> to vector<3x274xbf16>
    %c3 = arith.constant 3 : index
    %c0_24 = arith.constant 0 : index
    %c0_25 = arith.constant 0 : index
    %19 = vector.load %arg2[%c3, %c0_24, %c0_25] : memref<9x8x3xbf16, #tpu.memory_space<vmem>>, vector<1x8x3xbf16>
    %20 = vector.shape_cast %19 : vector<1x8x3xbf16> to vector<8x3xbf16>
    %cst_26 = arith.constant dense<0.000000e+00> : vector<8x274xf32>
    %21 = tpu.matmul %20, %18, %cst_26 {dimension_numbers = #tpu.dot_dimension_numbers<[1], [0], [0], [1], [0, 0, 1, 1], [], []>} : vector<8x3xbf16>, vector<3x274xbf16>, vector<8x274xf32> -> vector<8x274xf32>
    %22 = arith.addf %16, %21 : vector<8x274xf32>
    %c0_27 = arith.constant 0 : index
    %c3_28 = arith.constant 3 : index
    %c0_29 = arith.constant 0 : index
    %c0_30 = arith.constant 0 : index
    %23 = vector.load %arg1[%c0_27, %c3_28, %c0_29, %c0_30] : memref<1x4x3x384xbf16, #tpu.memory_space<vmem>>, vector<1x1x3x274xbf16>
    %24 = vector.shape_cast %23 : vector<1x1x3x274xbf16> to vector<3x274xbf16>
    %c4 = arith.constant 4 : index
    %c0_31 = arith.constant 0 : index
    %c0_32 = arith.constant 0 : index
    %25 = vector.load %arg2[%c4, %c0_31, %c0_32] : memref<9x8x3xbf16, #tpu.memory_space<vmem>>, vector<1x8x3xbf16>
    %26 = vector.shape_cast %25 : vector<1x8x3xbf16> to vector<8x3xbf16>
    %cst_33 = arith.constant dense<0.000000e+00> : vector<8x274xf32>
    %27 = tpu.matmul %26, %24, %cst_33 {dimension_numbers = #tpu.dot_dimension_numbers<[1], [0], [0], [1], [0, 0, 1, 1], [], []>} : vector<8x3xbf16>, vector<3x274xbf16>, vector<8x274xf32> -> vector<8x274xf32>
    %28 = arith.addf %22, %27 : vector<8x274xf32>
    %c0_34 = arith.constant 0 : index
    %c2_35 = arith.constant 2 : index
    %c0_36 = arith.constant 0 : index
    %c1_37 = arith.constant 1 : index
    %29 = vector.load %arg1[%c0_34, %c2_35, %c0_36, %c1_37] : memref<1x4x3x384xbf16, #tpu.memory_space<vmem>>, vector<1x1x3x274xbf16>
    %30 = vector.shape_cast %29 : vector<1x1x3x274xbf16> to vector<3x274xbf16>
    %c5 = arith.constant 5 : index
    %c0_38 = arith.constant 0 : index
    %c0_39 = arith.constant 0 : index
    %31 = vector.load %arg2[%c5, %c0_38, %c0_39] : memref<9x8x3xbf16, #tpu.memory_space<vmem>>, vector<1x8x3xbf16>
    %32 = vector.shape_cast %31 : vector<1x8x3xbf16> to vector<8x3xbf16>
    %cst_40 = arith.constant dense<0.000000e+00> : vector<8x274xf32>
    %33 = tpu.matmul %32, %30, %cst_40 {dimension_numbers = #tpu.dot_dimension_numbers<[1], [0], [0], [1], [0, 0, 1, 1], [], []>} : vector<8x3xbf16>, vector<3x274xbf16>, vector<8x274xf32> -> vector<8x274xf32>
    %34 = arith.addf %28, %33 : vector<8x274xf32>
    %c0_41 = arith.constant 0 : index
    %c0_42 = arith.constant 0 : index
    %c0_43 = arith.constant 0 : index
    %c8 = arith.constant 8 : index
    %35 = vector.load %arg1[%c0_41, %c0_42, %c0_43, %c8] : memref<1x4x3x384xbf16, #tpu.memory_space<vmem>>, vector<1x1x3x274xbf16>
    %36 = vector.shape_cast %35 : vector<1x1x3x274xbf16> to vector<3x274xbf16>
    %c6 = arith.constant 6 : index
    %c0_44 = arith.constant 0 : index
    %c0_45 = arith.constant 0 : index
    %37 = vector.load %arg2[%c6, %c0_44, %c0_45] : memref<9x8x3xbf16, #tpu.memory_space<vmem>>, vector<1x8x3xbf16>
    %38 = vector.shape_cast %37 : vector<1x8x3xbf16> to vector<8x3xbf16>
    %cst_46 = arith.constant dense<0.000000e+00> : vector<8x274xf32>
    %39 = tpu.matmul %38, %36, %cst_46 {dimension_numbers = #tpu.dot_dimension_numbers<[1], [0], [0], [1], [0, 0, 1, 1], [], []>} : vector<8x3xbf16>, vector<3x274xbf16>, vector<8x274xf32> -> vector<8x274xf32>
    %40 = arith.addf %34, %39 : vector<8x274xf32>
    %c0_47 = arith.constant 0 : index
    %c1_48 = arith.constant 1 : index
    %c0_49 = arith.constant 0 : index
    %c8_50 = arith.constant 8 : index
    %41 = vector.load %arg1[%c0_47, %c1_48, %c0_49, %c8_50] : memref<1x4x3x384xbf16, #tpu.memory_space<vmem>>, vector<1x1x3x274xbf16>
    %42 = vector.shape_cast %41 : vector<1x1x3x274xbf16> to vector<3x274xbf16>
    %c7 = arith.constant 7 : index
    %c0_51 = arith.constant 0 : index
    %c0_52 = arith.constant 0 : index
    %43 = vector.load %arg2[%c7, %c0_51, %c0_52] : memref<9x8x3xbf16, #tpu.memory_space<vmem>>, vector<1x8x3xbf16>
    %44 = vector.shape_cast %43 : vector<1x8x3xbf16> to vector<8x3xbf16>
    %cst_53 = arith.constant dense<0.000000e+00> : vector<8x274xf32>
    %45 = tpu.matmul %44, %42, %cst_53 {dimension_numbers = #tpu.dot_dimension_numbers<[1], [0], [0], [1], [0, 0, 1, 1], [], []>} : vector<8x3xbf16>, vector<3x274xbf16>, vector<8x274xf32> -> vector<8x274xf32>
    %46 = arith.addf %40, %45 : vector<8x274xf32>
    %c0_54 = arith.constant 0 : index
    %c0_55 = arith.constant 0 : index
    %c0_56 = arith.constant 0 : index
    %c9 = arith.constant 9 : index
    %47 = vector.load %arg1[%c0_54, %c0_55, %c0_56, %c9] : memref<1x4x3x384xbf16, #tpu.memory_space<vmem>>, vector<1x1x3x274xbf16>
    %48 = vector.shape_cast %47 : vector<1x1x3x274xbf16> to vector<3x274xbf16>
    %c8_57 = arith.constant 8 : index
    %c0_58 = arith.constant 0 : index
    %c0_59 = arith.constant 0 : index
    %49 = vector.load %arg2[%c8_57, %c0_58, %c0_59] : memref<9x8x3xbf16, #tpu.memory_space<vmem>>, vector<1x8x3xbf16>
    %50 = vector.shape_cast %49 : vector<1x8x3xbf16> to vector<8x3xbf16>
    %cst_60 = arith.constant dense<0.000000e+00> : vector<8x274xf32>
    %51 = tpu.matmul %50, %48, %cst_60 {dimension_numbers = #tpu.dot_dimension_numbers<[1], [0], [0], [1], [0, 0, 1, 1], [], []>} : vector<8x3xbf16>, vector<3x274xbf16>, vector<8x274xf32> -> vector<8x274xf32>
    %52 = arith.addf %46, %51 : vector<8x274xf32>
    %c0_61 = arith.constant 0 : index
    %c0_62 = arith.constant 0 : index
    %53 = vector.load %arg3[%c0_61, %c0_62] : memref<8x1xf32, #tpu.memory_space<vmem>>, vector<8x1xf32>
    %54 = vector.broadcast %53 : vector<8x1xf32> to vector<8x274xf32>
    %55 = arith.addf %52, %54 : vector<8x274xf32>
    %cst_63 = arith.constant 0.000000e+00 : f32
    %56 = vector.broadcast %cst_63 : f32 to vector<8x274xf32>
    %57 = arith.maximumf %55, %56 : vector<8x274xf32>
    %58 = arith.truncf %57 : vector<8x274xf32> to vector<8x274xbf16>
    %c0_64 = arith.constant 0 : index
    %c0_65 = arith.constant 0 : index
    %c0_66 = arith.constant 0 : index
    %59 = vector.load %arg4[%c0_64, %c0_65, %c0_66] : memref<9x8x8xbf16, #tpu.memory_space<vmem>>, vector<1x8x8xbf16>
    %60 = vector.shape_cast %59 : vector<1x8x8xbf16> to vector<8x8xbf16>
    %61 = vector.extract_strided_slice %58 {offsets = [0, 0], sizes = [8, 256], strides = [1, 1]} : vector<8x274xbf16> to vector<8x256xbf16>
    %cst_67 = arith.constant dense<0.000000e+00> : vector<8x256xf32>
    %62 = tpu.matmul %60, %61, %cst_67 {dimension_numbers = #tpu.dot_dimension_numbers<[1], [0], [0], [1], [0, 0, 1, 1], [], []>} : vector<8x8xbf16>, vector<8x256xbf16>, vector<8x256xf32> -> vector<8x256xf32>
    %c1_68 = arith.constant 1 : index
    %c0_69 = arith.constant 0 : index
    %c0_70 = arith.constant 0 : index
    %63 = vector.load %arg4[%c1_68, %c0_69, %c0_70] : memref<9x8x8xbf16, #tpu.memory_space<vmem>>, vector<1x8x8xbf16>
    %64 = vector.shape_cast %63 : vector<1x8x8xbf16> to vector<8x8xbf16>
    %65 = vector.extract_strided_slice %58 {offsets = [0, 1], sizes = [8, 256], strides = [1, 1]} : vector<8x274xbf16> to vector<8x256xbf16>
    %cst_71 = arith.constant dense<0.000000e+00> : vector<8x256xf32>
    %66 = tpu.matmul %64, %65, %cst_71 {dimension_numbers = #tpu.dot_dimension_numbers<[1], [0], [0], [1], [0, 0, 1, 1], [], []>} : vector<8x8xbf16>, vector<8x256xbf16>, vector<8x256xf32> -> vector<8x256xf32>
    %67 = arith.addf %62, %66 : vector<8x256xf32>
    %c2_72 = arith.constant 2 : index
    %c0_73 = arith.constant 0 : index
    %c0_74 = arith.constant 0 : index
    %68 = vector.load %arg4[%c2_72, %c0_73, %c0_74] : memref<9x8x8xbf16, #tpu.memory_space<vmem>>, vector<1x8x8xbf16>
    %69 = vector.shape_cast %68 : vector<1x8x8xbf16> to vector<8x8xbf16>
    %70 = vector.extract_strided_slice %58 {offsets = [0, 2], sizes = [8, 256], strides = [1, 1]} : vector<8x274xbf16> to vector<8x256xbf16>
    %cst_75 = arith.constant dense<0.000000e+00> : vector<8x256xf32>
    %71 = tpu.matmul %69, %70, %cst_75 {dimension_numbers = #tpu.dot_dimension_numbers<[1], [0], [0], [1], [0, 0, 1, 1], [], []>} : vector<8x8xbf16>, vector<8x256xbf16>, vector<8x256xf32> -> vector<8x256xf32>
    %72 = arith.addf %67, %71 : vector<8x256xf32>
    %c3_76 = arith.constant 3 : index
    %c0_77 = arith.constant 0 : index
    %c0_78 = arith.constant 0 : index
    %73 = vector.load %arg4[%c3_76, %c0_77, %c0_78] : memref<9x8x8xbf16, #tpu.memory_space<vmem>>, vector<1x8x8xbf16>
    %74 = vector.shape_cast %73 : vector<1x8x8xbf16> to vector<8x8xbf16>
    %75 = vector.extract_strided_slice %58 {offsets = [0, 8], sizes = [8, 256], strides = [1, 1]} : vector<8x274xbf16> to vector<8x256xbf16>
    %cst_79 = arith.constant dense<0.000000e+00> : vector<8x256xf32>
    %76 = tpu.matmul %74, %75, %cst_79 {dimension_numbers = #tpu.dot_dimension_numbers<[1], [0], [0], [1], [0, 0, 1, 1], [], []>} : vector<8x8xbf16>, vector<8x256xbf16>, vector<8x256xf32> -> vector<8x256xf32>
    %77 = arith.addf %72, %76 : vector<8x256xf32>
    %c4_80 = arith.constant 4 : index
    %c0_81 = arith.constant 0 : index
    %c0_82 = arith.constant 0 : index
    %78 = vector.load %arg4[%c4_80, %c0_81, %c0_82] : memref<9x8x8xbf16, #tpu.memory_space<vmem>>, vector<1x8x8xbf16>
    %79 = vector.shape_cast %78 : vector<1x8x8xbf16> to vector<8x8xbf16>
    %80 = vector.extract_strided_slice %58 {offsets = [0, 9], sizes = [8, 256], strides = [1, 1]} : vector<8x274xbf16> to vector<8x256xbf16>
    %cst_83 = arith.constant dense<0.000000e+00> : vector<8x256xf32>
    %81 = tpu.matmul %79, %80, %cst_83 {dimension_numbers = #tpu.dot_dimension_numbers<[1], [0], [0], [1], [0, 0, 1, 1], [], []>} : vector<8x8xbf16>, vector<8x256xbf16>, vector<8x256xf32> -> vector<8x256xf32>
    %82 = arith.addf %77, %81 : vector<8x256xf32>
    %c5_84 = arith.constant 5 : index
    %c0_85 = arith.constant 0 : index
    %c0_86 = arith.constant 0 : index
    %83 = vector.load %arg4[%c5_84, %c0_85, %c0_86] : memref<9x8x8xbf16, #tpu.memory_space<vmem>>, vector<1x8x8xbf16>
    %84 = vector.shape_cast %83 : vector<1x8x8xbf16> to vector<8x8xbf16>
    %85 = vector.extract_strided_slice %58 {offsets = [0, 10], sizes = [8, 256], strides = [1, 1]} : vector<8x274xbf16> to vector<8x256xbf16>
    %cst_87 = arith.constant dense<0.000000e+00> : vector<8x256xf32>
    %86 = tpu.matmul %84, %85, %cst_87 {dimension_numbers = #tpu.dot_dimension_numbers<[1], [0], [0], [1], [0, 0, 1, 1], [], []>} : vector<8x8xbf16>, vector<8x256xbf16>, vector<8x256xf32> -> vector<8x256xf32>
    %87 = arith.addf %82, %86 : vector<8x256xf32>
    %c6_88 = arith.constant 6 : index
    %c0_89 = arith.constant 0 : index
    %c0_90 = arith.constant 0 : index
    %88 = vector.load %arg4[%c6_88, %c0_89, %c0_90] : memref<9x8x8xbf16, #tpu.memory_space<vmem>>, vector<1x8x8xbf16>
    %89 = vector.shape_cast %88 : vector<1x8x8xbf16> to vector<8x8xbf16>
    %90 = vector.extract_strided_slice %58 {offsets = [0, 16], sizes = [8, 256], strides = [1, 1]} : vector<8x274xbf16> to vector<8x256xbf16>
    %cst_91 = arith.constant dense<0.000000e+00> : vector<8x256xf32>
    %91 = tpu.matmul %89, %90, %cst_91 {dimension_numbers = #tpu.dot_dimension_numbers<[1], [0], [0], [1], [0, 0, 1, 1], [], []>} : vector<8x8xbf16>, vector<8x256xbf16>, vector<8x256xf32> -> vector<8x256xf32>
    %92 = arith.addf %87, %91 : vector<8x256xf32>
    %c7_92 = arith.constant 7 : index
    %c0_93 = arith.constant 0 : index
    %c0_94 = arith.constant 0 : index
    %93 = vector.load %arg4[%c7_92, %c0_93, %c0_94] : memref<9x8x8xbf16, #tpu.memory_space<vmem>>, vector<1x8x8xbf16>
    %94 = vector.shape_cast %93 : vector<1x8x8xbf16> to vector<8x8xbf16>
    %95 = vector.extract_strided_slice %58 {offsets = [0, 17], sizes = [8, 256], strides = [1, 1]} : vector<8x274xbf16> to vector<8x256xbf16>
    %cst_95 = arith.constant dense<0.000000e+00> : vector<8x256xf32>
    %96 = tpu.matmul %94, %95, %cst_95 {dimension_numbers = #tpu.dot_dimension_numbers<[1], [0], [0], [1], [0, 0, 1, 1], [], []>} : vector<8x8xbf16>, vector<8x256xbf16>, vector<8x256xf32> -> vector<8x256xf32>
    %97 = arith.addf %92, %96 : vector<8x256xf32>
    %c8_96 = arith.constant 8 : index
    %c0_97 = arith.constant 0 : index
    %c0_98 = arith.constant 0 : index
    %98 = vector.load %arg4[%c8_96, %c0_97, %c0_98] : memref<9x8x8xbf16, #tpu.memory_space<vmem>>, vector<1x8x8xbf16>
    %99 = vector.shape_cast %98 : vector<1x8x8xbf16> to vector<8x8xbf16>
    %100 = vector.extract_strided_slice %58 {offsets = [0, 18], sizes = [8, 256], strides = [1, 1]} : vector<8x274xbf16> to vector<8x256xbf16>
    %cst_99 = arith.constant dense<0.000000e+00> : vector<8x256xf32>
    %101 = tpu.matmul %99, %100, %cst_99 {dimension_numbers = #tpu.dot_dimension_numbers<[1], [0], [0], [1], [0, 0, 1, 1], [], []>} : vector<8x8xbf16>, vector<8x256xbf16>, vector<8x256xf32> -> vector<8x256xf32>
    %102 = arith.addf %97, %101 : vector<8x256xf32>
    %c0_100 = arith.constant 0 : index
    %c0_101 = arith.constant 0 : index
    %103 = vector.load %arg5[%c0_100, %c0_101] : memref<8x1xf32, #tpu.memory_space<vmem>>, vector<8x1xf32>
    %104 = vector.broadcast %103 : vector<8x1xf32> to vector<8x256xf32>
    %105 = arith.addf %102, %104 : vector<8x256xf32>
    %cst_102 = arith.constant 0.000000e+00 : f32
    %106 = vector.broadcast %cst_102 : f32 to vector<8x256xf32>
    %107 = arith.maximumf %105, %106 : vector<8x256xf32>
    %108 = arith.truncf %107 : vector<8x256xf32> to vector<8x256xbf16>
    %109 = vector.extract_strided_slice %108 {offsets = [0, 0], sizes = [8, 128], strides = [1, 1]} : vector<8x256xbf16> to vector<8x128xbf16>
    %c0_103 = arith.constant 0 : index
    %c0_104 = arith.constant 0 : index
    %c0_105 = arith.constant 0 : index
    %110 = vector.load %arg6[%c0_103, %c0_104, %c0_105] : memref<2x8x128xbf16, #tpu.memory_space<vmem>>, vector<1x8x128xbf16>
    %111 = vector.shape_cast %110 : vector<1x8x128xbf16> to vector<8x128xbf16>
    %112 = vector.shape_cast %109 : vector<8x128xbf16> to vector<1x8x128xbf16>
    tpu.vector_store %arg6[%c0_103, %c0_104, %c0_105], %112 {strides = array<i32>} : memref<2x8x128xbf16, #tpu.memory_space<vmem>>, vector<1x8x128xbf16>,
    %113 = vector.extract_strided_slice %108 {offsets = [0, 128], sizes = [8, 128], strides = [1, 1]} : vector<8x256xbf16> to vector<8x128xbf16>
    %c1_106 = arith.constant 1 : index
    %c0_107 = arith.constant 0 : index
    %c0_108 = arith.constant 0 : index
    %114 = vector.load %arg6[%c1_106, %c0_107, %c0_108] : memref<2x8x128xbf16, #tpu.memory_space<vmem>>, vector<1x8x128xbf16>
    %115 = vector.shape_cast %114 : vector<1x8x128xbf16> to vector<8x128xbf16>
    %116 = vector.shape_cast %113 : vector<8x128xbf16> to vector<1x8x128xbf16>
    tpu.vector_store %arg6[%c1_106, %c0_107, %c0_108], %116 {strides = array<i32>} : memref<2x8x128xbf16, #tpu.memory_space<vmem>>, vector<1x8x128xbf16>,
    return
  }
  func.func @transform_0(%arg0: i32) -> (i32, i32, i32, i32) {
    %c0_i32 = arith.constant 0 : i32
    %c0_i32_0 = arith.constant 0 : i32
    %c0_i32_1 = arith.constant 0 : i32
    %c0_i32_2 = arith.constant 0 : i32
    return %arg0, %c0_i32, %c0_i32_0, %c0_i32_1 : i32, i32, i32, i32
  }
  func.func @transform_1(%arg0: i32) -> (i32, i32, i32) {
    %c0_i32 = arith.constant 0 : i32
    %c0_i32_0 = arith.constant 0 : i32
    %c0_i32_1 = arith.constant 0 : i32
    %c0_i32_2 = arith.constant 0 : i32
    return %c0_i32, %c0_i32_0, %c0_i32_1 : i32, i32, i32
  }
  func.func @transform_2(%arg0: i32) -> (i32, i32) {
    %c0_i32 = arith.constant 0 : i32
    %c0_i32_0 = arith.constant 0 : i32
    %c0_i32_1 = arith.constant 0 : i32
    return %c0_i32, %c0_i32_0 : i32, i32
  }
  func.func @transform_3(%arg0: i32) -> (i32, i32, i32) {
    %c0_i32 = arith.constant 0 : i32
    %c0_i32_0 = arith.constant 0 : i32
    %c0_i32_1 = arith.constant 0 : i32
    %c0_i32_2 = arith.constant 0 : i32
    return %c0_i32, %c0_i32_0, %c0_i32_1 : i32, i32, i32
  }
  func.func @transform_4(%arg0: i32) -> (i32, i32) {
    %c0_i32 = arith.constant 0 : i32
    %c0_i32_0 = arith.constant 0 : i32
    %c0_i32_1 = arith.constant 0 : i32
    return %c0_i32, %c0_i32_0 : i32, i32
  }
  func.func @transform_5(%arg0: i32) -> (i32, i32, i32) {
    %c0_i32 = arith.constant 0 : i32
    %c0_i32_0 = arith.constant 0 : i32
    %c0_i32_1 = arith.constant 0 : i32
    return %arg0, %c0_i32, %c0_i32_0 : i32, i32, i32
  }
}

module attributes {stable_mosaic.version = 11 : i64} {
  func.func @_mlp_head_kernel(%arg0: i32, %arg1: memref<2x1024xbf16, #tpu.memory_space<vmem>>, %arg2: memref<1024x32xbf16, #tpu.memory_space<vmem>>, %arg3: memref<1x32xf32, #tpu.memory_space<vmem>>, %arg4: memref<1x32xf32, #tpu.memory_space<vmem>>, %arg5: memref<1x32xf32, #tpu.memory_space<vmem>>, %arg6: memref<32x32xbf16, #tpu.memory_space<vmem>>, %arg7: memref<1x32xf32, #tpu.memory_space<vmem>>, %arg8: memref<32x32xbf16, #tpu.memory_space<vmem>>, %arg9: memref<1x32xf32, #tpu.memory_space<vmem>>, %arg10: memref<32x8xbf16, #tpu.memory_space<vmem>>, %arg11: memref<1x8xf32, #tpu.memory_space<vmem>>, %arg12: memref<2x4xf32, #tpu.memory_space<vmem>>, %arg13: memref<2x128xf32, #tpu.memory_space<vmem>>) attributes {dimension_semantics = [#tpu.dimension_semantics<parallel>], iteration_bounds = array<i64: 1>, scalar_prefetch = 0 : i64, scratch_operands = 0 : i64, tpu.core_type = #tpu.core_type<tc>, window_params = [{transform_indices = @transform_0, window_bounds = array<i64: 2, 1024>}, {pipeline_mode = #tpu.pipeline_mode<synchronous>, transform_indices = @transform_1, window_bounds = array<i64: 1024, 32>}, {pipeline_mode = #tpu.pipeline_mode<synchronous>, transform_indices = @transform_2, window_bounds = array<i64: 1, 32>}, {pipeline_mode = #tpu.pipeline_mode<synchronous>, transform_indices = @transform_3, window_bounds = array<i64: 1, 32>}, {pipeline_mode = #tpu.pipeline_mode<synchronous>, transform_indices = @transform_4, window_bounds = array<i64: 1, 32>}, {pipeline_mode = #tpu.pipeline_mode<synchronous>, transform_indices = @transform_5, window_bounds = array<i64: 32, 32>}, {pipeline_mode = #tpu.pipeline_mode<synchronous>, transform_indices = @transform_6, window_bounds = array<i64: 1, 32>}, {pipeline_mode = #tpu.pipeline_mode<synchronous>, transform_indices = @transform_7, window_bounds = array<i64: 32, 32>}, {pipeline_mode = #tpu.pipeline_mode<synchronous>, transform_indices = @transform_8, window_bounds = array<i64: 1, 32>}, {pipeline_mode = #tpu.pipeline_mode<synchronous>, transform_indices = @transform_9, window_bounds = array<i64: 32, 8>}, {pipeline_mode = #tpu.pipeline_mode<synchronous>, transform_indices = @transform_10, window_bounds = array<i64: 1, 8>}, {transform_indices = @transform_11, window_bounds = array<i64: 2, 4>}, {transform_indices = @transform_12, window_bounds = array<i64: 2, 128>}]} {
    %c0 = arith.constant 0 : index
    %c0_0 = arith.constant 0 : index
    %0 = vector.load %arg1[%c0, %c0_0] : memref<2x1024xbf16, #tpu.memory_space<vmem>>, vector<2x1024xbf16>
    %c0_1 = arith.constant 0 : index
    %c0_2 = arith.constant 0 : index
    %1 = vector.load %arg2[%c0_1, %c0_2] : memref<1024x32xbf16, #tpu.memory_space<vmem>>, vector<1024x32xbf16>
    %cst = arith.constant dense<0.000000e+00> : vector<2x32xf32>
    %2 = tpu.matmul %0, %1, %cst {dimension_numbers = #tpu.dot_dimension_numbers<[1], [0], [0], [1], [0, 0, 1, 1], [], []>} : vector<2x1024xbf16>, vector<1024x32xbf16>, vector<2x32xf32> -> vector<2x32xf32>
    %c0_3 = arith.constant 0 : index
    %c0_4 = arith.constant 0 : index
    %3 = vector.load %arg3[%c0_3, %c0_4] : memref<1x32xf32, #tpu.memory_space<vmem>>, vector<1x32xf32>
    %4 = vector.broadcast %3 : vector<1x32xf32> to vector<2x32xf32>
    %5 = arith.addf %2, %4 : vector<2x32xf32>
    %cst_5 = arith.constant dense<0.000000e+00> : vector<2xf32>
    %6 = vector.multi_reduction <add>, %5, %cst_5 [1] : vector<2x32xf32> to vector<2xf32>
    %7 = vector.shape_cast %6 : vector<2xf32> to vector<2x1xf32>
    %cst_6 = arith.constant 3.200000e+01 : f32
    %8 = vector.broadcast %cst_6 : f32 to vector<2x1xf32>
    %9 = arith.divf %7, %8 : vector<2x1xf32>
    %10 = vector.broadcast %9 : vector<2x1xf32> to vector<2x32xf32>
    %11 = arith.subf %5, %10 : vector<2x32xf32>
    %12 = vector.broadcast %9 : vector<2x1xf32> to vector<2x32xf32>
    %13 = arith.subf %5, %12 : vector<2x32xf32>
    %14 = arith.mulf %11, %13 : vector<2x32xf32>
    %cst_7 = arith.constant dense<0.000000e+00> : vector<2xf32>
    %15 = vector.multi_reduction <add>, %14, %cst_7 [1] : vector<2x32xf32> to vector<2xf32>
    %16 = vector.shape_cast %15 : vector<2xf32> to vector<2x1xf32>
    %cst_8 = arith.constant 3.200000e+01 : f32
    %17 = vector.broadcast %cst_8 : f32 to vector<2x1xf32>
    %18 = arith.divf %16, %17 : vector<2x1xf32>
    %19 = vector.broadcast %9 : vector<2x1xf32> to vector<2x32xf32>
    %20 = arith.subf %5, %19 : vector<2x32xf32>
    %cst_9 = arith.constant 9.99999974E-6 : f32
    %21 = vector.broadcast %cst_9 : f32 to vector<2x1xf32>
    %22 = arith.addf %18, %21 : vector<2x1xf32>
    %23 = math.rsqrt %22 : vector<2x1xf32>
    %24 = vector.broadcast %23 : vector<2x1xf32> to vector<2x32xf32>
    %25 = arith.mulf %20, %24 : vector<2x32xf32>
    %c0_10 = arith.constant 0 : index
    %c0_11 = arith.constant 0 : index
    %26 = vector.load %arg4[%c0_10, %c0_11] : memref<1x32xf32, #tpu.memory_space<vmem>>, vector<1x32xf32>
    %27 = vector.broadcast %26 : vector<1x32xf32> to vector<2x32xf32>
    %28 = arith.mulf %25, %27 : vector<2x32xf32>
    %c0_12 = arith.constant 0 : index
    %c0_13 = arith.constant 0 : index
    %29 = vector.load %arg5[%c0_12, %c0_13] : memref<1x32xf32, #tpu.memory_space<vmem>>, vector<1x32xf32>
    %30 = vector.broadcast %29 : vector<1x32xf32> to vector<2x32xf32>
    %31 = arith.addf %28, %30 : vector<2x32xf32>
    %32 = arith.truncf %31 : vector<2x32xf32> to vector<2x32xbf16>
    %c0_14 = arith.constant 0 : index
    %c0_15 = arith.constant 0 : index
    %33 = vector.load %arg6[%c0_14, %c0_15] : memref<32x32xbf16, #tpu.memory_space<vmem>>, vector<32x32xbf16>
    %cst_16 = arith.constant dense<0.000000e+00> : vector<2x32xf32>
    %34 = tpu.matmul %32, %33, %cst_16 {dimension_numbers = #tpu.dot_dimension_numbers<[1], [0], [0], [1], [0, 0, 1, 1], [], []>} : vector<2x32xbf16>, vector<32x32xbf16>, vector<2x32xf32> -> vector<2x32xf32>
    %c0_17 = arith.constant 0 : index
    %c0_18 = arith.constant 0 : index
    %35 = vector.load %arg7[%c0_17, %c0_18] : memref<1x32xf32, #tpu.memory_space<vmem>>, vector<1x32xf32>
    %36 = vector.broadcast %35 : vector<1x32xf32> to vector<2x32xf32>
    %37 = arith.addf %34, %36 : vector<2x32xf32>
    %cst_19 = arith.constant 0.000000e+00 : f32
    %38 = vector.broadcast %cst_19 : f32 to vector<2x32xf32>
    %39 = arith.maximumf %37, %38 : vector<2x32xf32>
    %40 = arith.truncf %39 : vector<2x32xf32> to vector<2x32xbf16>
    %c0_20 = arith.constant 0 : index
    %c0_21 = arith.constant 0 : index
    %41 = vector.load %arg8[%c0_20, %c0_21] : memref<32x32xbf16, #tpu.memory_space<vmem>>, vector<32x32xbf16>
    %cst_22 = arith.constant dense<0.000000e+00> : vector<2x32xf32>
    %42 = tpu.matmul %40, %41, %cst_22 {dimension_numbers = #tpu.dot_dimension_numbers<[1], [0], [0], [1], [0, 0, 1, 1], [], []>} : vector<2x32xbf16>, vector<32x32xbf16>, vector<2x32xf32> -> vector<2x32xf32>
    %c0_23 = arith.constant 0 : index
    %c0_24 = arith.constant 0 : index
    %43 = vector.load %arg9[%c0_23, %c0_24] : memref<1x32xf32, #tpu.memory_space<vmem>>, vector<1x32xf32>
    %44 = vector.broadcast %43 : vector<1x32xf32> to vector<2x32xf32>
    %45 = arith.addf %42, %44 : vector<2x32xf32>
    %cst_25 = arith.constant 0.000000e+00 : f32
    %46 = vector.broadcast %cst_25 : f32 to vector<2x32xf32>
    %47 = arith.maximumf %45, %46 : vector<2x32xf32>
    %48 = arith.truncf %47 : vector<2x32xf32> to vector<2x32xbf16>
    %c0_26 = arith.constant 0 : index
    %c0_27 = arith.constant 0 : index
    %49 = vector.load %arg10[%c0_26, %c0_27] : memref<32x8xbf16, #tpu.memory_space<vmem>>, vector<32x8xbf16>
    %cst_28 = arith.constant dense<0.000000e+00> : vector<2x8xf32>
    %50 = tpu.matmul %48, %49, %cst_28 {dimension_numbers = #tpu.dot_dimension_numbers<[1], [0], [0], [1], [0, 0, 1, 1], [], []>} : vector<2x32xbf16>, vector<32x8xbf16>, vector<2x8xf32> -> vector<2x8xf32>
    %c0_29 = arith.constant 0 : index
    %c0_30 = arith.constant 0 : index
    %51 = vector.load %arg11[%c0_29, %c0_30] : memref<1x8xf32, #tpu.memory_space<vmem>>, vector<1x8xf32>
    %52 = vector.broadcast %51 : vector<1x8xf32> to vector<2x8xf32>
    %53 = arith.addf %50, %52 : vector<2x8xf32>
    %54 = vector.extract_strided_slice %53 {offsets = [0, 0], sizes = [2, 4], strides = [1, 1]} : vector<2x8xf32> to vector<2x4xf32>
    %55 = vector.extract_strided_slice %53 {offsets = [0, 4], sizes = [2, 4], strides = [1, 1]} : vector<2x8xf32> to vector<2x4xf32>
    %56 = math.tanh %55 : vector<2x4xf32>
    %cst_31 = arith.constant 1.000000e+00 : f32
    %57 = vector.broadcast %cst_31 : f32 to vector<2x4xf32>
    %58 = arith.addf %56, %57 : vector<2x4xf32>
    %cst_32 = arith.constant 6.000000e+00 : f32
    %59 = vector.broadcast %cst_32 : f32 to vector<2x4xf32>
    %60 = arith.mulf %59, %58 : vector<2x4xf32>
    %cst_33 = arith.constant -1.000000e+01 : f32
    %61 = vector.broadcast %cst_33 : f32 to vector<2x4xf32>
    %62 = arith.addf %61, %60 : vector<2x4xf32>
    %63 = math.exp %62 : vector<2x4xf32>
    %c0_34 = arith.constant 0 : index
    %c0_35 = arith.constant 0 : index
    %64 = vector.load %arg12[%c0_34, %c0_35] : memref<2x4xf32, #tpu.memory_space<vmem>>, vector<2x4xf32>
    %65 = arith.mulf %64, %63 : vector<2x4xf32>
    %66 = arith.addf %54, %65 : vector<2x4xf32>
    %cst_36 = arith.constant -5.000000e-01 : f32
    %67 = vector.broadcast %cst_36 : f32 to vector<2x4xf32>
    %68 = arith.mulf %67, %64 : vector<2x4xf32>
    %69 = arith.mulf %68, %64 : vector<2x4xf32>
    %70 = arith.subf %69, %62 : vector<2x4xf32>
    %cst_37 = arith.constant dense<0.000000e+00> : vector<2xf32>
    %71 = vector.multi_reduction <add>, %70, %cst_37 [1] : vector<2x4xf32> to vector<2xf32>
    %72 = vector.shape_cast %71 : vector<2xf32> to vector<2x1xf32>
    %cst_38 = arith.constant 3.67575407 : f32
    %73 = vector.broadcast %cst_38 : f32 to vector<2x1xf32>
    %74 = arith.subf %72, %73 : vector<2x1xf32>
    %75 = math.tanh %54 : vector<2x4xf32>
    %76 = math.tanh %66 : vector<2x4xf32>
    %77 = arith.mulf %76, %76 : vector<2x4xf32>
    %cst_39 = arith.constant 1.000000e+00 : f32
    %78 = vector.broadcast %cst_39 : f32 to vector<2x4xf32>
    %79 = arith.subf %78, %77 : vector<2x4xf32>
    %cst_40 = arith.constant 0.000000e+00 : f32
    %80 = vector.broadcast %cst_40 : f32 to vector<2x4xf32>
    %81 = arith.maximumf %79, %80 : vector<2x4xf32>
    %cst_41 = arith.constant 9.99999997E-7 : f32
    %82 = vector.broadcast %cst_41 : f32 to vector<2x4xf32>
    %83 = arith.addf %81, %82 : vector<2x4xf32>
    %84 = math.log %83 : vector<2x4xf32>
    %cst_42 = arith.constant dense<0.000000e+00> : vector<2xf32>
    %85 = vector.multi_reduction <add>, %84, %cst_42 [1] : vector<2x4xf32> to vector<2xf32>
    %86 = vector.shape_cast %85 : vector<2xf32> to vector<2x1xf32>
    %87 = arith.subf %74, %86 : vector<2x1xf32>
    %cst_43 = arith.constant 0.000000e+00 : f32
    %88 = vector.broadcast %cst_43 : f32 to vector<2x128xf32>
    %c0_44 = arith.constant 0 : index
    %c0_45 = arith.constant 0 : index
    %89 = vector.load %arg13[%c0_44, %c0_45] : memref<2x128xf32, #tpu.memory_space<vmem>>, vector<2x128xf32>
    tpu.vector_store %arg13[%c0_44, %c0_45], %88 {strides = array<i32>} : memref<2x128xf32, #tpu.memory_space<vmem>>, vector<2x128xf32>,
    %c0_46 = arith.constant 0 : index
    %c0_47 = arith.constant 0 : index
    %90 = vector.load %arg13[%c0_46, %c0_47] : memref<2x128xf32, #tpu.memory_space<vmem>>, vector<2x4xf32>
    tpu.vector_store %arg13[%c0_46, %c0_47], %75 {strides = array<i32>} : memref<2x128xf32, #tpu.memory_space<vmem>>, vector<2x4xf32>,
    %c0_48 = arith.constant 0 : index
    %c4 = arith.constant 4 : index
    %91 = vector.load %arg13[%c0_48, %c4] : memref<2x128xf32, #tpu.memory_space<vmem>>, vector<2x4xf32>
    tpu.vector_store %arg13[%c0_48, %c4], %76 {strides = array<i32>} : memref<2x128xf32, #tpu.memory_space<vmem>>, vector<2x4xf32>,
    %c0_49 = arith.constant 0 : index
    %c8 = arith.constant 8 : index
    %92 = vector.load %arg13[%c0_49, %c8] : memref<2x128xf32, #tpu.memory_space<vmem>>, vector<2x4xf32>
    tpu.vector_store %arg13[%c0_49, %c8], %62 {strides = array<i32>} : memref<2x128xf32, #tpu.memory_space<vmem>>, vector<2x4xf32>,
    %c0_50 = arith.constant 0 : index
    %c12 = arith.constant 12 : index
    %93 = vector.load %arg13[%c0_50, %c12] : memref<2x128xf32, #tpu.memory_space<vmem>>, vector<2x1xf32>
    tpu.vector_store %arg13[%c0_50, %c12], %87 {strides = array<i32>} : memref<2x128xf32, #tpu.memory_space<vmem>>, vector<2x1xf32>,
    return
  }
  func.func @transform_0(%arg0: i32) -> (i32, i32) {
    %c0_i32 = arith.constant 0 : i32
    %c0_i32_0 = arith.constant 0 : i32
    return %arg0, %c0_i32 : i32, i32
  }
  func.func @transform_1(%arg0: i32) -> (i32, i32) {
    %c0_i32 = arith.constant 0 : i32
    %c0_i32_0 = arith.constant 0 : i32
    %c0_i32_1 = arith.constant 0 : i32
    return %c0_i32, %c0_i32_0 : i32, i32
  }
  func.func @transform_2(%arg0: i32) -> (i32, i32) {
    %c0_i32 = arith.constant 0 : i32
    %c0_i32_0 = arith.constant 0 : i32
    %c0_i32_1 = arith.constant 0 : i32
    return %c0_i32, %c0_i32_0 : i32, i32
  }
  func.func @transform_3(%arg0: i32) -> (i32, i32) {
    %c0_i32 = arith.constant 0 : i32
    %c0_i32_0 = arith.constant 0 : i32
    %c0_i32_1 = arith.constant 0 : i32
    return %c0_i32, %c0_i32_0 : i32, i32
  }
  func.func @transform_4(%arg0: i32) -> (i32, i32) {
    %c0_i32 = arith.constant 0 : i32
    %c0_i32_0 = arith.constant 0 : i32
    %c0_i32_1 = arith.constant 0 : i32
    return %c0_i32, %c0_i32_0 : i32, i32
  }
  func.func @transform_5(%arg0: i32) -> (i32, i32) {
    %c0_i32 = arith.constant 0 : i32
    %c0_i32_0 = arith.constant 0 : i32
    %c0_i32_1 = arith.constant 0 : i32
    return %c0_i32, %c0_i32_0 : i32, i32
  }
  func.func @transform_6(%arg0: i32) -> (i32, i32) {
    %c0_i32 = arith.constant 0 : i32
    %c0_i32_0 = arith.constant 0 : i32
    %c0_i32_1 = arith.constant 0 : i32
    return %c0_i32, %c0_i32_0 : i32, i32
  }
  func.func @transform_7(%arg0: i32) -> (i32, i32) {
    %c0_i32 = arith.constant 0 : i32
    %c0_i32_0 = arith.constant 0 : i32
    %c0_i32_1 = arith.constant 0 : i32
    return %c0_i32, %c0_i32_0 : i32, i32
  }
  func.func @transform_8(%arg0: i32) -> (i32, i32) {
    %c0_i32 = arith.constant 0 : i32
    %c0_i32_0 = arith.constant 0 : i32
    %c0_i32_1 = arith.constant 0 : i32
    return %c0_i32, %c0_i32_0 : i32, i32
  }
  func.func @transform_9(%arg0: i32) -> (i32, i32) {
    %c0_i32 = arith.constant 0 : i32
    %c0_i32_0 = arith.constant 0 : i32
    %c0_i32_1 = arith.constant 0 : i32
    return %c0_i32, %c0_i32_0 : i32, i32
  }
  func.func @transform_10(%arg0: i32) -> (i32, i32) {
    %c0_i32 = arith.constant 0 : i32
    %c0_i32_0 = arith.constant 0 : i32
    %c0_i32_1 = arith.constant 0 : i32
    return %c0_i32, %c0_i32_0 : i32, i32
  }
  func.func @transform_11(%arg0: i32) -> (i32, i32) {
    %c0_i32 = arith.constant 0 : i32
    %c0_i32_0 = arith.constant 0 : i32
    return %arg0, %c0_i32 : i32, i32
  }
  func.func @transform_12(%arg0: i32) -> (i32, i32) {
    %c0_i32 = arith.constant 0 : i32
    %c0_i32_0 = arith.constant 0 : i32
    return %arg0, %c0_i32 : i32, i32
  }
}

</mosaic_0001>

<bundles_post_ra>
// kernel: actor_forward.2
= control target key start
LH: loop header
LB: loop body
LE: loop exit
PB: predicated region body
PF: predicated region fallthrough
CT: control target
= control target key end

     0   :  { %v32_v0 = vlaneseq  ;;  %v1857_v1 = vmov 1983009808   ;;  %v1858_v3 = vmov 0.0   ;;  %vm48_vm0 = vcmask 1040384   ;;  %s1862_s28 = smov 127   ;;  %s1863_s12 = smov 120   ;;  %s2187_s0 = inlined_call_operand.vmem [shape: bf16[1,4,3,384], index: 0, kind: input, shape index: {}]   ;;  %s2188_s1 = inlined_call_operand.vmem [shape: bf16[9,8,3], index: 1, kind: input, shape index: {}]   ;;  %s2189_s2 = inlined_call_operand.vmem [shape: f32[8,1], index: 2, kind: input, shape index: {}]   ;;  %s2190_s3 = inlined_call_operand.vmem [shape: bf16[9,8,8], index: 3, kind: input, shape index: {}]   ;;  %s2191_s4 = inlined_call_operand.vmem [shape: f32[8,1], index: 4, kind: input, shape index: {}]   ;;  %s2192_s5 = inlined_call_operand.vmem [shape: bf16[2,8,128], index: 5, kind: output, shape index: {}]  }
   0x1   :  { %v30_v2 = vunpack.c.l.s4 %v1857_v1  ;;  %1779 = vmatprep.subr.bf16.mxu1 %v1858_v3  ;;  %v252_v6 = vld [vmem:[%s2187_s0] sm:$0x3f]  ;;  %v1698_v7 = vld [vmem:[%s2187_s0 + $0x6] sm:$0x3f]  ;;  %v1715_v8 = vld [vmem:[%s2187_s0 + $0xc] sm:$0x3f] }
   0x2   :  { %v33_v4 = vshrl.u32 %v32_v0, 7  ;;  %v21_v9 = vld [vmem:[%s2187_s0] sm:$0x3f]  ;;  %vm1859_vm1 = vmmov 0   ;;  %v1707_v11 = vld [vmem:[%s2187_s0 + $0xc] sm:$0x3f]  ;;  %v256_v12 = vcombine.high %v252_v6, %v252_v6  ;;  %v28_v13 = vcombine.high %v1698_v7, %v1698_v7 }
   0x3   :  { %v31_v5 = vunpack.c.0.s8 %v30_v2  ;;  %1781 = vmatprep.mubr.msk.bf16.mxu1 %vm1859_vm1, %v1858_v3  ;;  %vm49_vm2 = vcmask 1041408   ;;  %v1860_v14 = vmov 65535   ;;  %v1861_v16 = vmov 0   ;;  %v735_v28 = vld [vmem:[%s2187_s0] sm:$0x3f]  ;;  %s1866_s10 = smov 118  }
   0x4   :  { %v50_v15 = vsel %vm48_vm0, 4294967295, %v1860_v14  ;;  %93 = vmatprep.mubr.bf16.mxu0 %v1861_v16  ;;  %1846 = vset.pattern.permute.xlu1 %v1861_v16  ;;  %v143_v19 = vcombine.high %v21_v9, %v21_v9  ;;  %v382_v20 = vcombine.high %v1707_v11, %v1707_v11  ;;  %v615_v24 = vcombine.high %v1715_v8, %v1715_v8  ;;  %v1711_v38 = vld [vmem:[%s2187_s0 + $0x12] sm:$0x3f]  ;;  %v1722_v41 = vld [vmem:[%s2187_s0 + $0x6] sm:$0x3f]  ;;  %s1867_s11 = smov 112  }
   0x5   :  { %v1913_v10 = vsub.s32 %v31_v5, %v33_v4  ;;  %1847 = vset.pattern.permute.xlu0 %v1861_v16  ;;  %v1926_v23 = vsel %vm49_vm2, %v50_v15, 0  ;;  %v739_v35 = vcombine.high %v735_v28, %v735_v28  ;;  %v499_v43 = vcombine.high %v1711_v38, %v1711_v38  ;;  %v1699_v44 = vld [vmem:[%s2188_s1 + $0x4] sm:$0xf]  ;;  %v22_v55 = vld [vmem:[%s2188_s1] sm:$0xf]  ;;  %s1868_s13 = smov 111  }
   0x6   :  { %vm44_vm3 = vcmask 23552   ;;  %v864_v54 = vcombine.high %v1722_v41, %v1722_v41  ;;  %v984_v56 = vld [vmem:[%s2187_s0] sm:$0x3f]  ;;  %s1864_s0 = smov 119   ;;  %vm278_vm4 = vcmask 1039360   ;;  %vm761_vm5 = vcmask 982016  }
   0x7   :  { %v263_v17 = vrot.slane %v252_v6, %v1913_v10  ;;  %v622_v18 = vrot.slane %v1715_v8, %v1913_v10  ;;  %v42_v25 = vrot.slane %v28_v13, %v1913_v10  ;;  %v35_v26 = vrot.slane %v1698_v7, %v1913_v10  ;;  %v1109_v62 = vld [vmem:[%s2189_s2] sm:$0xff]  ;;  %s1869_s14 = smov 110  }
   0x8   :  { %v270_v27 = vrot.slane %v256_v12, %v1913_v10  ;;  %v157_v29 = vrot.slane %v143_v19, %v1913_v10  ;;  %v150_v30 = vrot.slane %v21_v9, %v1913_v10  ;;  %v1938_v31 = vrot.slane %v382_v20, %v1913_v10 }
   0x9   :  { %272 = vrot.lane.b32.xlu1 %v263_v17, %s1862_s28  ;;  %v271_v21 = vcombine.high %v263_v17, %v263_v17  ;;  %v630_v22 = vcombine.high %v622_v18, %v622_v18  ;;  %v59_v32 = vand.u32 %v1926_v23, %v42_v25  ;;  %v43_v33 = vcombine.high %v35_v26, %v35_v26 }
   0xa   :  { %v1942_v34 = vrot.slane %v1707_v11, %v1913_v10  ;;  %v53_v36 = vand.u32 %v1926_v23, %v35_v26  ;;  %v158_v37 = vcombine.high %v150_v30, %v150_v30  ;;  %v629_v39 = vrot.slane %v615_v24, %v1913_v10  ;;  %v1704_v11 = vld [vmem:[%s2188_s1 + $0x8] sm:$0xf] }
   0xb   :  { %274 = vrot.lane.b32.xlu0 %v271_v21, %s1862_s28  ;;  %v746_v40 = vrot.slane %v735_v28, %v1913_v10  ;;  %1780 = vmatpush3.bf16.msra.mxu1 %v59_v32  ;;  %v56_v42 = vand.u32 %v1926_v23, %v43_v33  ;;  %v169_v45 = vand.u32 %v157_v29, %v1926_v23  ;;  %v1712_v29 = vld [vmem:[%s2188_s1 + $0x10] sm:$0xf]  ;;  %vm1010_vm6 = vcmask 973824  }
   0xc   :  { %1785 = vmatprep.subr.bf16.mxu1 %v1858_v3  ;;  %v166_v46 = vand.u32 %v158_v37, %v1926_v23  ;;  %v1963_v47 = vrot.slane %v1711_v38, %v1913_v10  ;;  %v1966_v48 = vrot.slane %v499_v43, %v1913_v10  ;;  %v753_v49 = vrot.slane %v739_v35, %v1913_v10  ;;  %v1716_v38 = vld [vmem:[%s2188_s1 + $0x14] sm:$0xf] }
   0xd   :  { %633 = vrot.lane.b32.xlu1 %v630_v22, %s1862_s28  ;;  %75 = vmatprep.subr.bf16.mxu0 %v56_v42  ;;  %v871_v50 = vrot.slane %v1722_v41, %v1913_v10  ;;  %v163_v51 = vand.u32 %v150_v30, %v1926_v23  ;;  %v754_v52 = vcombine.high %v746_v40, %v746_v40  ;;  %vm1142_vm7 = vcmask 1043456  }
   0xe   :  { %76 = vmatpush1.bf16.msra.mxu0 %v53_v36  ;;  %1782 = vmatmul.mubr.msk.bf16.vlgmr.msra.gmra.mxu1 %vm44_vm3, %v1699_v44  ;;  %v988_v57 = vcombine.high %v984_v56, %v984_v56  ;;  %v878_v58 = vrot.slane %v864_v54, %v1913_v10  ;;  %v995_v59 = vrot.slane %v984_v56, %v1913_v10  ;;  %v1723_v54 = vld [vmem:[%s2188_s1 + $0x1c] sm:$0xf]  ;;  %v1726_v56 = vld [vmem:[%s2188_s1 + $0x20] sm:$0xf]  ;;  %vm1138_vm8 = vcmask 64512  }
   0xf   :  { %276 = vrot.lane.b32.xlu0 %v270_v27, %s1862_s28  ;;  %185 = vmatprep.subr.bf16.mxu0 %v166_v46  ;;  %v879_v53 = vcombine.high %v871_v50, %v871_v50  ;;  %v397_v1 = vcombine.high %v1942_v34, %v1942_v34  ;;  %v514_v9 = vcombine.high %v1963_v47, %v1963_v47  ;;  %vm1248_vm9 = vcmask 1031168  }
  0x10   :  { %1786 = vmatpush3.bf16.msra.mxu1 %v169_v45  ;;  %1787 = vmatprep.mubr.msk.bf16.mxu1 %vm1859_vm1, %v1858_v3  ;;  %v1002_v60 = vrot.slane %v988_v57, %v1913_v10  ;;  %v1003_v61 = vcombine.high %v995_v59, %v995_v59  ;;  %v408_v12 = vand.u32 %v1938_v31, %v1926_v23  ;;  %vm1435_vm10 = vcmask 965632  }
  0x11   :  { %631 = vrot.lane.b32.xlu1 %v622_v18, %s1862_s28  ;;  %1700 = vmatmul.mubr.msk.bf16.vlgmr.msra.gmra.mxu0 %vm44_vm3, %v1699_v44  ;;  %v405_v8 = vand.u32 %v397_v1, %v1926_v23  ;;  %v402_v13 = vand.u32 %v1942_v34, %v1926_v23  ;;  %v522_v15 = vand.u32 %v514_v9, %v1926_v23  ;;  %v1708_v18 = vld [vmem:[%s2188_s1 + $0xc] sm:$0xf]  ;;  %vm1498_vm11 = vcmask 916480  }
  0x12   :  { %186 = vmatpush1.bf16.msra.mxu0 %v163_v51  ;;  %203 = vmatprep.mubr.bf16.mxu0 %v1861_v16  ;;  %v525_v19 = vand.u32 %v1966_v48, %v1926_v23  ;;  %v519_v22 = vand.u32 %v1963_v47, %v1926_v23  ;;  %v1719_v47 = vld [vmem:[%s2188_s1 + $0x18] sm:$0xf]  ;;  %s1865_s1 = smov 126   ;;  %vm1561_vm12 = vcmask 908288   ;;  %vm1624_vm13 = vcmask 900096  }
  0x13   :  { %635 = vrot.lane.b32.xlu0 %v629_v39, %s1862_s28  ;;  %1791 = vmatprep.subr.bf16.mxu1 %v1858_v3 }
  0x15   :  { %759 = vrot.lane.b32.xlu1 %v753_v49, %s1863_s12 }
  0x16   :  { %1788 = vmatmul.mubr.msk.bf16.vlgmr.msra.gmra.mxu1 %vm44_vm3, %v22_v55 }
  0x17   :  { %757 = vrot.lane.b32.xlu0 %v754_v52, %s1863_s12  ;;  %1793 = vmatprep.mubr.msk.bf16.mxu1 %vm1859_vm1, %v1858_v3 }
  0x19   :  { %882 = vrot.lane.b32.xlu1 %v879_v53, %s1863_s12  ;;  %1702 = vmatmul.mubr.msk.bf16.vlgmr.msra.gmra.mxu0 %vm44_vm3, %v22_v55 }
  0x1a   :  { %325 = vmatprep.mubr.bf16.mxu0 %v1861_v16 }
  0x1b   :  { %755 = vrot.lane.b32.xlu0 %v746_v40, %s1863_s12 }
  0x1d   :  { %880 = vrot.lane.b32.xlu1 %v871_v50, %s1863_s12 }
  0x1f   :  { %884 = vrot.lane.b32.xlu0 %v878_v58, %s1863_s12 }
  0x21   :  { %1008 = vrot.lane.b32.xlu1 %v1002_v60, %s1864_s0 }
  0x23   :  { %1006 = vrot.lane.b32.xlu0 %v1003_v61, %s1864_s0 }
  0x25   :  { %1112 = vperm.xlu1 %1846, %v1109_v62  }
  0x27   :  { %1004 = vrot.lane.b32.xlu0 %v995_v59, %s1864_s0 }
  0x7b   :  { %v273_v0 = vpop.permute.xlu1 %272 }
  0x7d   :  { %v275_v63 = vpop.permute.xlu0 %274 }
  0x7e   :  { %v279_v2 = vsel %vm278_vm4, %v273_v0, %v275_v63 }
  0x7f   :  { %v285_v10 = vand.u32 %v279_v2, %v1926_v23  ;;  %v634_v14 = vpop.permute.xlu1 %633 }
  0x81   :  { %v277_v4 = vpop.permute.xlu0 %276 }
  0x82   :  { %v280_v5 = vsel %vm278_vm4, %v275_v63, %v277_v4  ;;  %v291_v6 = vand.u32 %v277_v4, %v1926_v23 }
  0x83   :  { %v288_v7 = vand.u32 %v280_v5, %v1926_v23  ;;  %v632_v21 = vpop.permute.xlu1 %631 }
  0x84   :  { %1792 = vmatpush3.bf16.msra.mxu1 %v291_v6  ;;  %v637_v27 = vsel %vm278_vm4, %v632_v21, %v634_v14 }
  0x85   :  { %307 = vmatprep.subr.bf16.mxu0 %v288_v7  ;;  %1797 = vmatprep.subr.bf16.mxu1 %v1858_v3  ;;  %v636_v17 = vpop.permute.xlu0 %635  ;;  %v643_v32 = vand.u32 %v637_v27, %v1926_v23 }
  0x86   :  { %308 = vmatpush1.bf16.msra.mxu0 %v285_v10  ;;  %v638_v20 = vsel %vm278_vm4, %v634_v14, %v636_v17  ;;  %v649_v28 = vand.u32 %v636_v17, %v1926_v23 }
  0x87   :  { %1794 = vmatmul.mubr.msk.bf16.vlgmr.msra.gmra.mxu1 %vm44_vm3, %v1704_v11  ;;  %424 = vmatprep.subr.bf16.mxu0 %v405_v8  ;;  %v646_v24 = vand.u32 %v638_v20, %v1926_v23  ;;  %v760_v26 = vpop.permute.xlu1 %759 }
  0x88   :  { %1798 = vmatpush3.bf16.msra.mxu1 %v408_v12  ;;  %1799 = vmatprep.mubr.msk.bf16.mxu1 %vm1859_vm1, %v1858_v3  ;;  %v774_v37 = vand.u32 %v760_v26, %v1926_v23 }
  0x89   :  { %1705 = vmatmul.mubr.msk.bf16.vlgmr.msra.gmra.mxu0 %vm44_vm3, %v1704_v11  ;;  %1803 = vmatprep.subr.bf16.mxu1 %v1858_v3  ;;  %v758_v25 = vpop.permute.xlu0 %757 }
  0x8a   :  { %425 = vmatpush1.bf16.msra.mxu0 %v402_v13  ;;  %442 = vmatprep.mubr.bf16.mxu0 %v1861_v16  ;;  %v763_v30 = vsel %vm761_vm5, %v758_v25, %v760_v26 }
  0x8b   :  { %541 = vmatprep.subr.bf16.mxu0 %v522_v15  ;;  %v771_v33 = vand.u32 %v763_v30, %v1926_v23  ;;  %v883_v34 = vpop.permute.xlu1 %882 }
  0x8d   :  { %v756_v31 = vpop.permute.xlu0 %755 }
  0x8e   :  { %v762_v36 = vsel %vm761_vm5, %v756_v31, %v758_v25 }
  0x8f   :  { %1800 = vmatmul.mubr.msk.bf16.vlgmr.msra.gmra.mxu1 %vm44_vm3, %v1708_v18  ;;  %v881_v40 = vpop.permute.xlu1 %880  ;;  %v768_v41 = vand.u32 %v762_v36, %v1926_v23 }
  0x90   :  { %1804 = vmatpush3.bf16.msra.mxu1 %v525_v19  ;;  %1805 = vmatprep.mubr.msk.bf16.mxu1 %vm1859_vm1, %v1858_v3  ;;  %v886_v45 = vsel %vm761_vm5, %v881_v40, %v883_v34 }
  0x91   :  { %1709 = vmatmul.mubr.msk.bf16.vlgmr.msra.gmra.mxu0 %vm44_vm3, %v1708_v18  ;;  %1809 = vmatprep.subr.bf16.mxu1 %v1858_v3  ;;  %v885_v35 = vpop.permute.xlu0 %884  ;;  %v892_v49 = vand.u32 %v886_v45, %v1926_v23 }
  0x92   :  { %542 = vmatpush1.bf16.msra.mxu0 %v519_v22  ;;  %559 = vmatprep.mubr.bf16.mxu0 %v1861_v16  ;;  %v887_v39 = vsel %vm761_vm5, %v883_v34, %v885_v35  ;;  %v898_v46 = vand.u32 %v885_v35, %v1926_v23 }
  0x93   :  { %665 = vmatprep.subr.bf16.mxu0 %v646_v24  ;;  %v895_v42 = vand.u32 %v887_v39, %v1926_v23  ;;  %v1009_v43 = vpop.permute.xlu1 %1008 }
  0x94   :  { %v1023_v53 = vand.u32 %v1009_v43, %v1926_v23 }
  0x95   :  { %v1007_v44 = vpop.permute.xlu0 %1006 }
  0x96   :  { %v1012_v48 = vsel %vm1010_vm6, %v1007_v44, %v1009_v43 }
  0x97   :  { %1806 = vmatmul.mubr.msk.bf16.vlgmr.msra.gmra.mxu1 %vm44_vm3, %v1712_v29  ;;  %v1020_v50 = vand.u32 %v1012_v48, %v1926_v23 }
  0x98   :  { %1810 = vmatpush3.bf16.msra.mxu1 %v649_v28  ;;  %1811 = vmatprep.mubr.msk.bf16.mxu1 %vm1859_vm1, %v1858_v3 }
  0x99   :  { %1713 = vmatmul.mubr.msk.bf16.vlgmr.msra.gmra.mxu0 %vm44_vm3, %v1712_v29  ;;  %1815 = vmatprep.subr.bf16.mxu1 %v1858_v3  ;;  %v1005_v51 = vpop.permute.xlu0 %1004 }
  0x9a   :  { %666 = vmatpush1.bf16.msra.mxu0 %v643_v32  ;;  %683 = vmatprep.mubr.bf16.mxu0 %v1861_v16  ;;  %v1011_v52 = vsel %vm1010_vm6, %v1005_v51, %v1007_v44 }
  0x9b   :  { %790 = vmatprep.subr.bf16.mxu0 %v771_v33  ;;  %v1017_v55 = vand.u32 %v1011_v52, %v1926_v23 }
  0x9f   :  { %1812 = vmatmul.mubr.msk.bf16.vlgmr.msra.gmra.mxu1 %vm44_vm3, %v1716_v38 }
  0xa0   :  { %1816 = vmatpush3.bf16.msra.mxu1 %v774_v37  ;;  %1817 = vmatprep.mubr.msk.bf16.mxu1 %vm1859_vm1, %v1858_v3 }
  0xa1   :  { %1717 = vmatmul.mubr.msk.bf16.vlgmr.msra.gmra.mxu0 %vm44_vm3, %v1716_v38  ;;  %1821 = vmatprep.subr.bf16.mxu1 %v1858_v3 }
  0xa2   :  { %791 = vmatpush1.bf16.msra.mxu0 %v768_v41  ;;  %808 = vmatprep.mubr.bf16.mxu0 %v1861_v16 }
  0xa3   :  { %914 = vmatprep.subr.bf16.mxu0 %v895_v42 }
  0xa7   :  { %1818 = vmatmul.mubr.msk.bf16.vlgmr.msra.gmra.mxu1 %vm44_vm3, %v1719_v47 }
  0xa8   :  { %1822 = vmatpush3.bf16.msra.mxu1 %v898_v46  ;;  %1823 = vmatprep.mubr.msk.bf16.mxu1 %vm1859_vm1, %v1858_v3 }
  0xa9   :  { %1720 = vmatmul.mubr.msk.bf16.vlgmr.msra.gmra.mxu0 %vm44_vm3, %v1719_v47  ;;  %1827 = vmatprep.subr.bf16.mxu1 %v1858_v3 }
  0xaa   :  { %915 = vmatpush1.bf16.msra.mxu0 %v892_v49  ;;  %932 = vmatprep.mubr.bf16.mxu0 %v1861_v16 }
  0xab   :  { %1039 = vmatprep.subr.bf16.mxu0 %v1020_v50 }
  0xaf   :  { %1824 = vmatmul.mubr.msk.bf16.vlgmr.msra.gmra.mxu1 %vm44_vm3, %v1723_v54 }
  0xb0   :  { %1828 = vmatpush3.bf16.msra.mxu1 %v1023_v53  ;;  %1829 = vmatprep.mubr.msk.bf16.mxu1 %vm1859_vm1, %v1858_v3 }
  0xb1   :  { %1724 = vmatmul.mubr.msk.bf16.vlgmr.msra.gmra.mxu0 %vm44_vm3, %v1723_v54 }
  0xb2   :  { %1040 = vmatpush1.bf16.msra.mxu0 %v1017_v55  ;;  %1057 = vmatprep.mubr.bf16.mxu0 %v1861_v16 }
  0xb7   :  { %1830 = vmatmul.mubr.msk.bf16.vlgmr.msra.gmra.mxu1 %vm44_vm3, %v1726_v56 }
  0xb8   :  { %1231 = vmatprep.mubr.bf16.mxu1 %v1861_v16 }
  0xb9   :  { %1727 = vmatmul.mubr.msk.bf16.vlgmr.msra.gmra.mxu0 %vm44_vm3, %v1726_v56 }
  0xba   :  { %1181 = vmatprep.mubr.bf16.mxu0 %v1861_v16 }
  0xce   :  { %v136_v23 = vpop.f32.mrf.mxu1 }
  0xd0   :  { %v1783_v3 = vpop.f32.mrf.mxu1 }
  0xd1   :  { %v95_v57 = vpop.f32.mrf.mxu0 }
  0xd2   :  { %v139_v59 = vpop.f32.mrf.mxu1 }
  0xd3   :  { %v97_v58 = vpop.f32.mrf.mxu0 }
  0xd4   :  { %v1784_v61 = vpop.f32.mrf.mxu1 }
  0xd5   :  { %v99_v60 = vpop.f32.mrf.mxu0 }
  0xd6   :  { %v246_v63 = vpop.f32.mrf.mxu1 }
  0xd7   :  { %v100_v62 = vpop.f32.mrf.mxu0  ;;  %v247_v0 = vadd.f32 %v246_v63, %v136_v23 }
  0xd8   :  { %v1789_v2 = vpop.f32.mrf.mxu1 }
  0xd9   :  { %v205_v1 = vpop.f32.mrf.mxu0 }
  0xda   :  { %v206_v4 = vadd.f32 %v205_v1, %v95_v57  ;;  %v249_v6 = vpop.f32.mrf.mxu1 }
  0xdb   :  { %v207_v5 = vpop.f32.mrf.mxu0 }
  0xdc   :  { %v208_v7 = vadd.f32 %v207_v5, %v97_v58  ;;  %v1790_v8 = vpop.f32.mrf.mxu1 }
  0xdd   :  { %v209_v9 = vpop.f32.mrf.mxu0 }
  0xdf   :  { %v210_v10 = vpop.f32.mrf.mxu0 }
 0x147   :  { %v368_v11 = vpop.f32.mrf.mxu1 }
 0x148   :  { %v376_v50 = vadd.f32 %v368_v11, %v247_v0  ;;  %v1113_v11 = vpop.permute.xlu1 %1112 }
 0x149   :  { %v327_v12 = vpop.f32.mrf.mxu0  ;;  %v1795_v13 = vpop.f32.mrf.mxu1 }
 0x14a   :  { %v374_v53 = vadd.f32 %v327_v12, %v206_v4 }
 0x14b   :  { %v329_v14 = vpop.f32.mrf.mxu0  ;;  %v371_v15 = vpop.f32.mrf.mxu1 }
 0x14c   :  { %v375_v23 = vadd.f32 %v329_v14, %v208_v7 }
 0x14d   :  { %v331_v17 = vpop.f32.mrf.mxu0  ;;  %v1796_v18 = vpop.f32.mrf.mxu1 }
 0x14f   :  { %v332_v19 = vpop.f32.mrf.mxu0  ;;  %v485_v20 = vpop.f32.mrf.mxu1 }
 0x150   :  { %v493_v54 = vadd.f32 %v485_v20, %v376_v50 }
 0x151   :  { %v444_v21 = vpop.f32.mrf.mxu0  ;;  %v1801_v22 = vpop.f32.mrf.mxu1 }
 0x152   :  { %v491_v57 = vadd.f32 %v444_v21, %v374_v53 }
 0x153   :  { %v446_v24 = vpop.f32.mrf.mxu0  ;;  %v488_v25 = vpop.f32.mrf.mxu1 }
 0x154   :  { %v492_v60 = vadd.f32 %v446_v24, %v375_v23 }
 0x155   :  { %v448_v26 = vpop.f32.mrf.mxu0  ;;  %v1802_v27 = vpop.f32.mrf.mxu1 }
 0x157   :  { %v449_v28 = vpop.f32.mrf.mxu0  ;;  %v602_v29 = vpop.f32.mrf.mxu1 }
 0x158   :  { %v610_v3 = vadd.f32 %v602_v29, %v493_v54 }
 0x159   :  { %v561_v30 = vpop.f32.mrf.mxu0  ;;  %v1807_v31 = vpop.f32.mrf.mxu1 }
 0x15a   :  { %v608_v61 = vadd.f32 %v561_v30, %v491_v57 }
 0x15b   :  { %v563_v32 = vpop.f32.mrf.mxu0  ;;  %v605_v33 = vpop.f32.mrf.mxu1 }
 0x15c   :  { %v609_v2 = vadd.f32 %v563_v32, %v492_v60 }
 0x15d   :  { %v565_v34 = vpop.f32.mrf.mxu0  ;;  %v1808_v35 = vpop.f32.mrf.mxu1 }
 0x15f   :  { %v566_v36 = vpop.f32.mrf.mxu0  ;;  %v726_v37 = vpop.f32.mrf.mxu1 }
 0x160   :  { %v734_v62 = vadd.f32 %v726_v37, %v610_v3 }
 0x161   :  { %v685_v38 = vpop.f32.mrf.mxu0  ;;  %v1813_v39 = vpop.f32.mrf.mxu1 }
 0x162   :  { %v732_v5 = vadd.f32 %v685_v38, %v608_v61  ;;  %v1124_v38 = vld [vmem:[%s2190_s3] sm:$0xf] }
 0x163   :  { %v687_v40 = vpop.f32.mrf.mxu0  ;;  %v729_v41 = vpop.f32.mrf.mxu1  ;;  %v1679_v39 = vld [vmem:[%s2191_s4] sm:$0xff] }
 0x164   :  { %v733_v9 = vadd.f32 %v687_v40, %v609_v2 }
 0x165   :  { %v689_v42 = vpop.f32.mrf.mxu0  ;;  %v1814_v43 = vpop.f32.mrf.mxu1 }
 0x167   :  { %v690_v44 = vpop.f32.mrf.mxu0  ;;  %v851_v45 = vpop.f32.mrf.mxu1 }
 0x168   :  { %v859_v6 = vadd.f32 %v851_v45, %v734_v62 }
 0x169   :  { %v810_v46 = vpop.f32.mrf.mxu0  ;;  %v1819_v47 = vpop.f32.mrf.mxu1 }
 0x16a   :  { %v857_v4 = vadd.f32 %v810_v46, %v732_v5 }
 0x16b   :  { %v812_v48 = vpop.f32.mrf.mxu0  ;;  %v854_v49 = vpop.f32.mrf.mxu1 }
 0x16c   :  { %v858_v13 = vadd.f32 %v812_v48, %v733_v9  ;;  %v1740_v9 = vld [vmem:[%s2190_s3 + $0x10] sm:$0xf] }
 0x16d   :  { %v814_v51 = vpop.f32.mrf.mxu0  ;;  %v1820_v52 = vpop.f32.mrf.mxu1 }
 0x16e   :  { %v1729_v51 = vld [vmem:[%s2190_s3 + $0x4] sm:$0xf] }
 0x16f   :  { %v815_v55 = vpop.f32.mrf.mxu0  ;;  %v975_v56 = vpop.f32.mrf.mxu1 }
 0x170   :  { %v983_v10 = vadd.f32 %v975_v56, %v859_v6 }
 0x171   :  { %v934_v58 = vpop.f32.mrf.mxu0  ;;  %v1825_v59 = vpop.f32.mrf.mxu1 }
 0x172   :  { %v981_v14 = vadd.f32 %v934_v58, %v857_v4  ;;  %v1734_v58 = vld [vmem:[%s2190_s3 + $0x8] sm:$0xf] }
 0x173   :  { %v936_v63 = vpop.f32.mrf.mxu0  ;;  %v978_v1 = vpop.f32.mrf.mxu1 }
 0x174   :  { %v982_v19 = vadd.f32 %v936_v63, %v858_v13  ;;  %v1737_v63 = vld [vmem:[%s2190_s3 + $0xc] sm:$0xf] }
 0x175   :  { %v938_v0 = vpop.f32.mrf.mxu0  ;;  %v1826_v8 = vpop.f32.mrf.mxu1 }
 0x177   :  { %v939_v12 = vpop.f32.mrf.mxu0  ;;  %v1100_v7 = vpop.f32.mrf.mxu1 }
 0x178   :  { %v1108_v15 = vadd.f32 %v1100_v7, %v983_v10  ;;  %v1743_v7 = vld [vmem:[%s2190_s3 + $0x14] sm:$0xf] }
 0x179   :  { %v1059_v17 = vpop.f32.mrf.mxu0  ;;  %v1831_v18 = vpop.f32.mrf.mxu1 }
 0x17a   :  { %v1117_v20 = vadd.f32 %v1113_v11, %v1108_v15  ;;  %v1106_v21 = vadd.f32 %v1059_v17, %v981_v14 }
 0x17b   :  { %v1061_v22 = vpop.f32.mrf.mxu0  ;;  %v1103_v24 = vpop.f32.mrf.mxu1 }
 0x17c   :  { %v1120_v25 = vmax.f32 %v1117_v20, 0.0  ;;  %v1115_v26 = vadd.f32 %v1113_v11, %v1106_v21  ;;  %v1107_v27 = vadd.f32 %v1061_v22, %v982_v19  ;;  %v1746_v20 = vld [vmem:[%s2190_s3 + $0x18] sm:$0xf] }
 0x17d   :  { %v1063_v28 = vpop.f32.mrf.mxu0  ;;  %v1832_v29 = vpop.f32.mrf.mxu1 }
 0x17e   :  { %v1123_v30 = vpack.c.bf16 %v1120_v25, %v1120_v25  ;;  %v1118_v31 = vmax.f32 %v1115_v26, 0.0  ;;  %v1116_v32 = vadd.f32 %v1113_v11, %v1107_v27  ;;  %v1749_v27 = vld [vmem:[%s2190_s3 + $0x1c] sm:$0xf] }
 0x17f   :  { %v1064_v33 = vpop.f32.mrf.mxu0 }
 0x180   :  { %v1121_v34 = vpack.c.bf16 %v1118_v31, %v1118_v31  ;;  %v1119_v35 = vmax.f32 %v1116_v32, 0.0  ;;  %1246 = vrot.lane.b32.xlu1 %v1123_v30, %s1865_s1  ;;  %1134 = vrot.lane.b32.xlu0 %v1123_v30, %s1862_s28  ;;  %v1752_v32 = vld [vmem:[%s2190_s3 + $0x20] sm:$0xf] }
 0x182   :  { %v1122_v36 = vpack.c.bf16 %v1119_v35, %v1119_v35  ;;  %v1194_v37 = vsel %vm1142_vm7, %v1121_v34, 0 }
 0x184   :  { %1732 = vmatprep.subr.msk.bf16.mxu1 %vm1142_vm7, %v1122_v36  ;;  %1242 = vrot.lane.b32.xlu1 %v1121_v34, %s1865_s1 }
 0x185   :  { %1309 = vrot.lane.b32.xlu0 %v1123_v30, %s1863_s12  ;;  %1214 = vmatpush1.bf16.msra.mxu1 %v1194_v37 }
 0x188   :  { %1367 = vrot.lane.b32.xlu1 %v1121_v34, %s1864_s0  ;;  %1733 = vmatmul.mubr.msk.bf16.vlgmr.msra.gmra.mxu1 %vm1138_vm8, %v1124_v38 }
 0x189   :  { %1130 = vrot.lane.b32.xlu0 %v1121_v34, %s1862_s28  ;;  %1354 = vmatprep.mubr.bf16.mxu1 %v1861_v16 }
 0x18c   :  { %1132 = vrot.lane.b32.xlu1 %v1122_v36, %s1862_s28 }
 0x18d   :  { %1305 = vrot.lane.b32.xlu0 %v1121_v34, %s1863_s12 }
 0x190   :  { %1371 = vrot.lane.b32.xlu1 %v1123_v30, %s1864_s0 }
 0x191   :  { %1429 = vrot.lane.b32.xlu0 %v1121_v34, %s1866_s10 }
 0x194   :  { %1492 = vrot.lane.b32.xlu1 %v1121_v34, %s1867_s11 }
 0x195   :  { %1244 = vrot.lane.b32.xlu0 %v1122_v36, %s1865_s1 }
 0x198   :  { %1307 = vrot.lane.b32.xlu1 %v1122_v36, %s1863_s12 }
 0x199   :  { %1433 = vrot.lane.b32.xlu0 %v1123_v30, %s1866_s10 }
 0x19c   :  { %1496 = vrot.lane.b32.xlu1 %v1123_v30, %s1867_s11 }
 0x19d   :  { %1369 = vrot.lane.b32.xlu0 %v1122_v36, %s1864_s0 }
 0x1a0   :  { %1431 = vrot.lane.b32.xlu1 %v1122_v36, %s1866_s10 }
 0x1a1   :  { %1555 = vrot.lane.b32.xlu0 %v1121_v34, %s1868_s13 }
 0x1a4   :  { %1618 = vrot.lane.b32.xlu1 %v1121_v34, %s1869_s14 }
 0x1a5   :  { %1494 = vrot.lane.b32.xlu0 %v1122_v36, %s1867_s11 }
 0x1a8   :  { %1557 = vrot.lane.b32.xlu1 %v1122_v36, %s1868_s13 }
 0x1a9   :  { %1559 = vrot.lane.b32.xlu0 %v1123_v30, %s1868_s13 }
 0x1ac   :  { %1622 = vrot.lane.b32.xlu1 %v1123_v30, %s1869_s14 }
 0x1ad   :  { %1620 = vrot.lane.b32.xlu0 %v1122_v36, %s1869_s14 }
 0x1b1   :  { %1682 = vperm.xlu0 %1847, %v1679_v39  }
 0x1f2   :  { %v1247_v40 = vpop.permute.xlu1 %1246  ;;  %v1135_v41 = vpop.permute.xlu0 %1134 }
 0x1f6   :  { %v1243_v42 = vpop.permute.xlu1 %1242 }
 0x1f7   :  { %v1310_v43 = vpop.permute.xlu0 %1309 }
 0x1fa   :  { %v1368_v44 = vpop.permute.xlu1 %1367 }
 0x1fb   :  { %v1131_v45 = vpop.permute.xlu0 %1130 }
 0x1fe   :  { %v1133_v46 = vpop.permute.xlu1 %1132 }
 0x1ff   :  { %v1136_v47 = vsel %vm278_vm4, %v1131_v45, %v1133_v46  ;;  %v1137_v48 = vsel %vm278_vm4, %v1133_v46, %v1135_v41  ;;  %v1306_v49 = vpop.permute.xlu0 %1305 }
 0x200   :  { %v1144_v50 = vsel %vm1142_vm7, %v1136_v47, 0  ;;  %1730 = vmatprep.subr.msk.bf16.mxu0 %vm1142_vm7, %v1137_v48 }
 0x201   :  { %1164 = vmatpush1.bf16.msra.mxu0 %v1144_v50 }
 0x202   :  { %v1372_v52 = vpop.permute.xlu1 %1371 }
 0x203   :  { %v1430_v53 = vpop.permute.xlu0 %1429 }
 0x204   :  { %1731 = vmatmul.mubr.msk.bf16.vlgmr.msra.gmra.mxu0 %vm1138_vm8, %v1729_v51 }
 0x205   :  { %1292 = vmatprep.mubr.bf16.mxu0 %v1861_v16 }
 0x206   :  { %v1493_v54 = vpop.permute.xlu1 %1492 }
 0x207   :  { %v1245_v55 = vpop.permute.xlu0 %1244 }
 0x208   :  { %v1249_v56 = vsel %vm1248_vm9, %v1243_v42, %v1245_v55  ;;  %v1250_v23 = vsel %vm1248_vm9, %v1245_v55, %v1247_v40 }
 0x209   :  { %v1255_v57 = vsel %vm1142_vm7, %v1249_v56, 0  ;;  %1735 = vmatprep.subr.msk.bf16.mxu0 %vm1142_vm7, %v1250_v23 }
 0x20a   :  { %1275 = vmatpush1.bf16.msra.mxu0 %v1255_v57  ;;  %v1308_v3 = vpop.permute.xlu1 %1307 }
 0x20b   :  { %v1311_v59 = vsel %vm761_vm5, %v1306_v49, %v1308_v3  ;;  %v1312_v60 = vsel %vm761_vm5, %v1308_v3, %v1310_v43  ;;  %v1434_v61 = vpop.permute.xlu0 %1433 }
 0x20c   :  { %v1317_v62 = vsel %vm1142_vm7, %v1311_v59, 0  ;;  %1738 = vmatprep.subr.msk.bf16.mxu1 %vm1142_vm7, %v1312_v60 }
 0x20d   :  { %1736 = vmatmul.mubr.msk.bf16.vlgmr.msra.gmra.mxu0 %vm1138_vm8, %v1734_v58  ;;  %1337 = vmatpush1.bf16.msra.mxu1 %v1317_v62 }
 0x20e   :  { %v1497_v1 = vpop.permute.xlu1 %1496  ;;  %1416 = vmatprep.mubr.bf16.mxu0 %v1861_v16 }
 0x20f   :  { %v1370_v2 = vpop.permute.xlu0 %1369 }
 0x210   :  { %v1373_v5 = vsel %vm1010_vm6, %v1368_v44, %v1370_v2  ;;  %v1374_v6 = vsel %vm1010_vm6, %v1370_v2, %v1372_v52  ;;  %1739 = vmatmul.mubr.msk.bf16.vlgmr.msra.gmra.mxu1 %vm1138_vm8, %v1737_v63 }
 0x211   :  { %v1379_v0 = vsel %vm1142_vm7, %v1373_v5, 0  ;;  %1741 = vmatprep.subr.msk.bf16.mxu0 %vm1142_vm7, %v1374_v6  ;;  %1479 = vmatprep.mubr.bf16.mxu1 %v1861_v16 }
 0x212   :  { %1399 = vmatpush1.bf16.msra.mxu0 %v1379_v0  ;;  %v1432_v8 = vpop.permute.xlu1 %1431 }
 0x213   :  { %v1436_v4 = vsel %vm1435_vm10, %v1430_v53, %v1432_v8  ;;  %v1437_v10 = vsel %vm1435_vm10, %v1432_v8, %v1434_v61  ;;  %v1556_v11 = vpop.permute.xlu0 %1555 }
 0x214   :  { %v1442_v12 = vsel %vm1142_vm7, %v1436_v4, 0  ;;  %1744 = vmatprep.subr.msk.bf16.mxu1 %vm1142_vm7, %v1437_v10 }
 0x215   :  { %1742 = vmatmul.mubr.msk.bf16.vlgmr.msra.gmra.mxu0 %vm1138_vm8, %v1740_v9  ;;  %1462 = vmatpush1.bf16.msra.mxu1 %v1442_v12 }
 0x216   :  { %v1619_v13 = vpop.permute.xlu1 %1618  ;;  %1542 = vmatprep.mubr.bf16.mxu0 %v1861_v16 }
 0x217   :  { %v1495_v14 = vpop.permute.xlu0 %1494 }
 0x218   :  { %v1499_v15 = vsel %vm1498_vm11, %v1493_v54, %v1495_v14  ;;  %v1500_v17 = vsel %vm1498_vm11, %v1495_v14, %v1497_v1  ;;  %1745 = vmatmul.mubr.msk.bf16.vlgmr.msra.gmra.mxu1 %vm1138_vm8, %v1743_v7 }
 0x219   :  { %v1505_v18 = vsel %vm1142_vm7, %v1499_v15, 0  ;;  %1747 = vmatprep.subr.msk.bf16.mxu0 %vm1142_vm7, %v1500_v17  ;;  %1605 = vmatprep.mubr.bf16.mxu1 %v1861_v16 }
 0x21a   :  { %1525 = vmatpush1.bf16.msra.mxu0 %v1505_v18  ;;  %v1558_v19 = vpop.permute.xlu1 %1557 }
 0x21b   :  { %v1562_v21 = vsel %vm1561_vm12, %v1556_v11, %v1558_v19  ;;  %v1560_v22 = vpop.permute.xlu0 %1559 }
 0x21c   :  { %v1568_v24 = vsel %vm1142_vm7, %v1562_v21, 0  ;;  %v1563_v25 = vsel %vm1561_vm12, %v1558_v19, %v1560_v22 }
 0x21d   :  { %1748 = vmatmul.mubr.msk.bf16.vlgmr.msra.gmra.mxu0 %vm1138_vm8, %v1746_v20  ;;  %1750 = vmatprep.subr.msk.bf16.mxu1 %vm1142_vm7, %v1563_v25 }
 0x21e   :  { %1588 = vmatpush1.bf16.msra.mxu1 %v1568_v24  ;;  %v1623_v26 = vpop.permute.xlu1 %1622  ;;  %1668 = vmatprep.mubr.bf16.mxu0 %v1861_v16 }
 0x21f   :  { %v1621_v28 = vpop.permute.xlu0 %1620 }
 0x220   :  { %v1625_v29 = vsel %vm1624_vm13, %v1619_v13, %v1621_v28  ;;  %v1626_v30 = vsel %vm1624_vm13, %v1621_v28, %v1623_v26 }
 0x221   :  { %v1631_v31 = vsel %vm1142_vm7, %v1625_v29, 0  ;;  %1751 = vmatmul.mubr.msk.bf16.vlgmr.msra.gmra.mxu1 %vm1138_vm8, %v1749_v27  ;;  %1753 = vmatprep.subr.msk.bf16.mxu0 %vm1142_vm7, %v1626_v30 }
 0x222   :  { %1651 = vmatpush1.bf16.msra.mxu0 %v1631_v31 }
 0x225   :  { %1754 = vmatmul.mubr.msk.bf16.vlgmr.msra.gmra.mxu0 %vm1138_vm8, %v1752_v32 }
 0x22c   :  { %v1683_v11 = vpop.permute.xlu0 %1682 }
 0x248   :  { %v1233_v33 = vpop.f32.mrf.mxu1 }
 0x24a   :  { %v1235_v34 = vpop.f32.mrf.mxu1 }
 0x24c   :  { %v1237_v35 = vpop.f32.mrf.mxu1 }
 0x24e   :  { %v1238_v16 = vpop.f32.mrf.mxu1 }
 0x2c4   :  { %v1183_v36 = vpop.f32.mrf.mxu0 }
 0x2c5   :  { %v1234_v50 = vadd.f32 %v1233_v33, %v1183_v36 }
 0x2c6   :  { %v1185_v37 = vpop.f32.mrf.mxu0 }
 0x2c7   :  { %v1236_v53 = vadd.f32 %v1235_v34, %v1185_v37 }
 0x2c8   :  { %v1187_v38 = vpop.f32.mrf.mxu0 }
 0x2ca   :  { %v1188_v39 = vpop.f32.mrf.mxu0 }
 0x2cd   :  { %v1294_v40 = vpop.f32.mrf.mxu0 }
 0x2ce   :  { %v1301_v54 = vadd.f32 %v1294_v40, %v1234_v50 }
 0x2cf   :  { %v1296_v41 = vpop.f32.mrf.mxu0 }
 0x2d0   :  { %v1356_v42 = vpop.f32.mrf.mxu1  ;;  %v1302_v23 = vadd.f32 %v1296_v41, %v1236_v53 }
 0x2d1   :  { %v1298_v43 = vpop.f32.mrf.mxu0  ;;  %v1363_v57 = vadd.f32 %v1356_v42, %v1301_v54 }
 0x2d2   :  { %v1358_v44 = vpop.f32.mrf.mxu1 }
 0x2d3   :  { %v1299_v45 = vpop.f32.mrf.mxu0  ;;  %v1364_v59 = vadd.f32 %v1358_v44, %v1302_v23 }
 0x2d4   :  { %v1360_v46 = vpop.f32.mrf.mxu1 }
 0x2d5   :  { %v1418_v47 = vpop.f32.mrf.mxu0 }
 0x2d6   :  { %v1361_v48 = vpop.f32.mrf.mxu1  ;;  %v1425_v60 = vadd.f32 %v1418_v47, %v1363_v57 }
 0x2d7   :  { %v1420_v49 = vpop.f32.mrf.mxu0 }
 0x2d8   :  { %v1481_v51 = vpop.f32.mrf.mxu1  ;;  %v1426_v63 = vadd.f32 %v1420_v49, %v1364_v59 }
 0x2d9   :  { %v1422_v52 = vpop.f32.mrf.mxu0  ;;  %v1488_v1 = vadd.f32 %v1481_v51, %v1425_v60 }
 0x2da   :  { %v1483_v55 = vpop.f32.mrf.mxu1 }
 0x2db   :  { %v1423_v56 = vpop.f32.mrf.mxu0  ;;  %v1489_v6 = vadd.f32 %v1483_v55, %v1426_v63 }
 0x2dc   :  { %v1485_v3 = vpop.f32.mrf.mxu1 }
 0x2dd   :  { %v1544_v58 = vpop.f32.mrf.mxu0 }
 0x2de   :  { %v1486_v61 = vpop.f32.mrf.mxu1  ;;  %v1551_v0 = vadd.f32 %v1544_v58, %v1488_v1 }
 0x2df   :  { %v1546_v62 = vpop.f32.mrf.mxu0 }
 0x2e0   :  { %v1552_v4 = vadd.f32 %v1546_v62, %v1489_v6 }
 0x2e1   :  { %v1548_v2 = vpop.f32.mrf.mxu0  ;;  %v1607_v5 = vpop.f32.mrf.mxu1 }
 0x2e2   :  { %v1614_v10 = vadd.f32 %v1607_v5, %v1551_v0 }
 0x2e3   :  { %v1549_v8 = vpop.f32.mrf.mxu0  ;;  %v1609_v9 = vpop.f32.mrf.mxu1 }
 0x2e4   :  { %v1615_v13 = vadd.f32 %v1609_v9, %v1552_v4 }
 0x2e5   :  { %v1670_v12 = vpop.f32.mrf.mxu0  ;;  %v1611_v7 = vpop.f32.mrf.mxu1 }
 0x2e6   :  { %v1677_v14 = vadd.f32 %v1670_v12, %v1614_v10 }
 0x2e7   :  { %v1672_v15 = vpop.f32.mrf.mxu0  ;;  %v1612_v17 = vpop.f32.mrf.mxu1 }
 0x2e8   :  { %v1678_v18 = vadd.f32 %v1672_v15, %v1615_v13  ;;  %v1685_v19 = vadd.f32 %v1683_v11, %v1677_v14 }
 0x2e9   :  { %v1674_v20 = vpop.f32.mrf.mxu0 }
 0x2ea   :  { %v1686_v21 = vadd.f32 %v1683_v11, %v1678_v18  ;;  %v1687_v24 = vmax.f32 %v1685_v19, 0.0 }
 0x2eb   :  { %v1675_v22 = vpop.f32.mrf.mxu0 }
 0x2ec   :  { %v1688_v25 = vmax.f32 %v1686_v21, 0.0 }
 0x2ee   :  { %v1759_v26 = vpack.c.bf16 %v1688_v25, %v1687_v24 }
 0x2f0   :  { %1760 = vst [vmem:[%s2192_s5] sm:$0xff] %v1759_v26  }

// kernel: actor_forward.3
= control target key start
LH: loop header
LB: loop body
LE: loop exit
PB: predicated region body
PF: predicated region fallthrough
CT: control target
= control target key end

     0   :  { %v1357_v22 = vmov 1966171168   ;;  %v183_v24 = vlaneseq  ;;  %vm780_vm0 = vcmask 254976   ;;  %vm1359_vm1 = vmmov 0   ;;  %s1698_s1 = inlined_call_operand.vmem [shape: bf16[1024,32], index: 1, kind: input, shape index: {}]   ;;  %s1699_s0 = inlined_call_operand.vmem [shape: bf16[2,1024], index: 0, kind: input, shape index: {}]   ;;  %s1700_s2 = inlined_call_operand.vmem [shape: f32[1,32], index: 2, kind: input, shape index: {}]   ;;  %s1701_s5 = inlined_call_operand.vmem [shape: bf16[32,32], index: 5, kind: input, shape index: {}]   ;;  %s1702_s7 = inlined_call_operand.vmem [shape: bf16[32,32], index: 7, kind: input, shape index: {}]   ;;  %s1703_s3 = inlined_call_operand.vmem [shape: f32[1,32], index: 3, kind: input, shape index: {}]   ;;  %s1704_s4 = inlined_call_operand.vmem [shape: f32[1,32], index: 4, kind: input, shape index: {}]   ;;  %s1705_s9 = inlined_call_operand.vmem [shape: bf16[32,8], index: 9, kind: input, shape index: {}]   ;;  %s1706_s6 = inlined_call_operand.vmem [shape: f32[1,32], index: 6, kind: input, shape index: {}]   ;;  %s1707_s8 = inlined_call_operand.vmem [shape: f32[1,32], index: 8, kind: input, shape index: {}]   ;;  %s1708_s12 = inlined_call_operand.vmem [shape: f32[2,128], index: 12, kind: output, shape index: {}]   ;;  %s1709_s10 = inlined_call_operand.vmem [shape: f32[1,8], index: 10, kind: input, shape index: {}]   ;;  %s1710_s11 = inlined_call_operand.vmem [shape: f32[2,4], index: 11, kind: input, shape index: {}]  }
   0x1   :  { %v1276_v0 = vld [vmem:[%s1698_s1 + $0x78] sm:$0xff]   ;;  %v1280_v4 = vld [vmem:[%s1698_s1 + $0x70] sm:$0xff]   ;;  %v1284_v8 = vld [vmem:[%s1698_s1 + $0x68] sm:$0xff]   ;;  %v181_v23 = vunpack.c.l.s4 %v1357_v22  ;;  %vm835_vm2 = vcmask 261120   ;;  %vm1035_vm3 = vcmask 25600   ;;  %vm1057_vm4 = vcmask 58400  }
   0x2   :  { %v1277_v1 = vld [vmem:[%s1698_s1 + $0xf8] sm:$0xff]   ;;  %1150 = vmatprep.subr.bf16.mxu0 %v1276_v0  ;;  %v1281_v5 = vld [vmem:[%s1698_s1 + $0xf0] sm:$0xff]   ;;  %v1285_v9 = vld [vmem:[%s1698_s1 + $0xe8] sm:$0xff]   ;;  %v184_v30 = vshrl.u32 %v183_v24, 7  ;;  %vm1062_vm5 = vcmask 91200   ;;  %vm1064_vm6 = vcmask 99424  }
   0x3   :  { %v1278_v2 = vld [vmem:[%s1698_s1 + $0x38] sm:$0xff]   ;;  %1172 = vmatprep.subr.bf16.mxu1 %v1277_v1  ;;  %v1282_v6 = vld [vmem:[%s1698_s1 + $0x30] sm:$0xff]   ;;  %v1286_v10 = vld [vmem:[%s1698_s1 + $0x28] sm:$0xff]   ;;  %v182_v29 = vunpack.c.0.s8 %v181_v23 }
   0x4   :  { %v1279_v3 = vld [vmem:[%s1698_s1 + $0xb8] sm:$0xff]   ;;  %1151 = vmatpush3.bf16.msra.mxu0 %v1278_v2  ;;  %v1283_v7 = vld [vmem:[%s1698_s1 + $0xb0] sm:$0xff]   ;;  %v1287_v11 = vld [vmem:[%s1698_s1 + $0xa8] sm:$0xff]  }
   0x5   :  { %1173 = vmatpush3.bf16.msra.mxu1 %v1279_v3  ;;  %1152 = vmatprep.subr.bf16.mxu0 %v1280_v4  ;;  %v1288_v12 = vld [vmem:[%s1698_s1 + $0x60] sm:$0xff]   ;;  %v1292_v16 = vld [vmem:[%s1698_s1 + $0x58] sm:$0xff]   ;;  %v1296_v20 = vld [vmem:[%s1698_s1 + $0x50] sm:$0xff]   ;;  %v1517_v35 = vsub.s32 %v182_v29, %v184_v30 }
   0x6   :  { %1174 = vmatprep.subr.bf16.mxu1 %v1281_v5  ;;  %v1289_v13 = vld [vmem:[%s1698_s1 + $0xe0] sm:$0xff]   ;;  %v1293_v17 = vld [vmem:[%s1698_s1 + $0xd8] sm:$0xff]   ;;  %v1297_v21 = vld [vmem:[%s1698_s1 + $0xd0] sm:$0xff]  }
   0x7   :  { %v1290_v14 = vld [vmem:[%s1698_s1 + $0x20] sm:$0xff]   ;;  %v1294_v18 = vld [vmem:[%s1698_s1 + $0x18] sm:$0xff]   ;;  %v1298_v25 = vld [vmem:[%s1698_s1 + $0x10] sm:$0xff]  }
   0x8   :  { %1153 = vmatpush3.bf16.msra.mxu0 %v1282_v6  ;;  %v1291_v15 = vld [vmem:[%s1698_s1 + $0xa0] sm:$0xff]   ;;  %v1295_v19 = vld [vmem:[%s1698_s1 + $0x98] sm:$0xff]   ;;  %v1299_v26 = vld [vmem:[%s1698_s1 + $0x90] sm:$0xff]  }
   0x9   :  { %1175 = vmatpush3.bf16.msra.mxu1 %v1283_v7  ;;  %1154 = vmatprep.subr.bf16.mxu0 %v1284_v8  ;;  %v1300_v27 = vld [vmem:[%s1698_s1 + $0x48] sm:$0xff]   ;;  %v1304_v33 = vld [vmem:[%s1698_s1 + $0x40] sm:$0xff]   ;;  %v1309_v41 = vld [vmem:[%s1698_s1 + $0x178] sm:$0xff]  }
   0xa   :  { %1176 = vmatprep.subr.bf16.mxu1 %v1285_v9  ;;  %v1301_v28 = vld [vmem:[%s1698_s1 + $0xc8] sm:$0xff]   ;;  %v1305_v34 = vld [vmem:[%s1698_s1 + $0xc0] sm:$0xff]   ;;  %v1310_v42 = vld [vmem:[%s1698_s1 + $0x1f8] sm:$0xff]  }
   0xb   :  { %v1302_v31 = vld [vmem:[%s1698_s1 + $0x8] sm:$0xff]   ;;  %v1306_v36 = vld [vmem:[%s1698_s1] sm:$0xff]   ;;  %v1311_v47 = vld [vmem:[%s1698_s1 + $0x138] sm:$0xff]  }
   0xc   :  { %1155 = vmatpush3.bf16.msra.mxu0 %v1286_v10  ;;  %v1303_v32 = vld [vmem:[%s1698_s1 + $0x88] sm:$0xff]   ;;  %v1307_v37 = vld [vmem:[%s1698_s1 + $0x80] sm:$0xff]   ;;  %v1313_v50 = vld [vmem:[%s1698_s1 + $0x170] sm:$0xff]  }
   0xd   :  { %1177 = vmatpush3.bf16.msra.mxu1 %v1287_v11  ;;  %1156 = vmatprep.subr.bf16.mxu0 %v1288_v12  ;;  %v42_v38 = vld [vmem:[%s1699_s0] sm:$0xff]  ;;  %v1312_v52 = vld [vmem:[%s1698_s1 + $0x1b8] sm:$0xff]   ;;  %v1314_v54 = vld [vmem:[%s1698_s1 + $0x1f0] sm:$0xff]  }
   0xe   :  { %1178 = vmatprep.subr.bf16.mxu1 %v1289_v13  ;;  %v179_v39 = vcombine.high %v42_v38, %v42_v38  ;;  %v186_v40 = vrot.slane %v42_v38, %v1517_v35  ;;  %v1315_v55 = vld [vmem:[%s1698_s1 + $0x130] sm:$0xff]   ;;  %v1317_v57 = vld [vmem:[%s1698_s1 + $0x168] sm:$0xff]   ;;  %v1321_v61 = vld [vmem:[%s1698_s1 + $0x160] sm:$0xff]  }
   0xf   :  { %v1316_v58 = vld [vmem:[%s1698_s1 + $0x1b0] sm:$0xff]   ;;  %v1318_v59 = vld [vmem:[%s1698_s1 + $0x1e8] sm:$0xff]   ;;  %v1322_v63 = vld [vmem:[%s1698_s1 + $0x1e0] sm:$0xff]  }
  0x10   :  { %1157 = vmatpush3.bf16.msra.mxu0 %v1290_v14  ;;  %v194_v43 = vcombine.high %v186_v40, %v186_v40  ;;  %v202_v44 = vrot.slane %v186_v40, %v1517_v35  ;;  %v1537_v45 = vrot.slane %v179_v39, %v1517_v35  ;;  %v1319_v60 = vld [vmem:[%s1698_s1 + $0x128] sm:$0xff]   ;;  %v1323_v0 = vld [vmem:[%s1698_s1 + $0x120] sm:$0xff]   ;;  %v1325_v1 = vld [vmem:[%s1698_s1 + $0x158] sm:$0xff]  }
  0x11   :  { %1179 = vmatpush3.bf16.msra.mxu1 %v1291_v15  ;;  %1158 = vmatprep.subr.bf16.mxu0 %v1292_v16  ;;  %v1320_v62 = vld [vmem:[%s1698_s1 + $0x1a8] sm:$0xff]   ;;  %v1324_v2 = vld [vmem:[%s1698_s1 + $0x1a0] sm:$0xff]   ;;  %v1326_v3 = vld [vmem:[%s1698_s1 + $0x1d8] sm:$0xff]  }
  0x12   :  { %1180 = vmatprep.subr.bf16.mxu1 %v1293_v17  ;;  %v216_v46 = vrot.slane %v194_v43, %v1517_v35  ;;  %v195_v48 = vcombine.high %v1537_v45, %v1537_v45  ;;  %v224_v49 = vcombine.high %v202_v44, %v202_v44  ;;  %v1327_v4 = vld [vmem:[%s1698_s1 + $0x118] sm:$0xff]   ;;  %v1329_v5 = vld [vmem:[%s1698_s1 + $0x150] sm:$0xff]   ;;  %v1333_v9 = vld [vmem:[%s1698_s1 + $0x148] sm:$0xff]   ;;  %v209_v17 = vrot.slane %v1537_v45, %v1517_v35 }
  0x13   :  { %v1328_v6 = vld [vmem:[%s1698_s1 + $0x198] sm:$0xff]   ;;  %v1330_v7 = vld [vmem:[%s1698_s1 + $0x1d0] sm:$0xff]   ;;  %v1334_v11 = vld [vmem:[%s1698_s1 + $0x1c8] sm:$0xff]  }
  0x14   :  { %1159 = vmatpush3.bf16.msra.mxu0 %v1294_v18  ;;  %652 = vmatprep.mubr.bf16.mxu0 %v216_v46  ;;  %v226_v51 = vcombine.high %v216_v46, %v216_v46  ;;  %v223_v53 = vrot.slane %v195_v48, %v1517_v35  ;;  %v1331_v8 = vld [vmem:[%s1698_s1 + $0x110] sm:$0xff]   ;;  %v1335_v12 = vld [vmem:[%s1698_s1 + $0x108] sm:$0xff]   ;;  %v1337_v13 = vld [vmem:[%s1698_s1 + $0x140] sm:$0xff]  }
  0x15   :  { %1181 = vmatpush3.bf16.msra.mxu1 %v1295_v19  ;;  %1160 = vmatprep.subr.bf16.mxu0 %v1296_v20  ;;  %v1332_v10 = vld [vmem:[%s1698_s1 + $0x190] sm:$0xff]   ;;  %v1336_v14 = vld [vmem:[%s1698_s1 + $0x188] sm:$0xff]   ;;  %v1338_v15 = vld [vmem:[%s1698_s1 + $0x1c0] sm:$0xff]   ;;  %v225_v19 = vcombine.high %v209_v17, %v209_v17 }
  0x16   :  { %1182 = vmatprep.subr.bf16.mxu1 %v1297_v21  ;;  %692 = vmatprep.mubr.bf16.mxu1 %v226_v51  ;;  %v227_v56 = vcombine.high %v223_v53, %v223_v53  ;;  %v1339_v16 = vld [vmem:[%s1698_s1 + $0x100] sm:$0xff]   ;;  %v1358_v51 = vmov 0.0  }
  0x17   :  { %v1340_v18 = vld [vmem:[%s1698_s1 + $0x180] sm:$0xff]   ;;  %1051 = vst [vmem:[%s1708_s12] sm:$0x3] %v1358_v51  ;;  %s1361_s1 = smov 4  }
  0x18   :  { %1161 = vmatpush3.bf16.msra.mxu0 %v1298_v25  ;;  %v1070_v29 = vld [vmem:[%s1700_s2] ss:$0 sm:$0xff] }
  0x19   :  { %1183 = vmatpush3.bf16.msra.mxu1 %v1299_v26  ;;  %1162 = vmatprep.subr.bf16.mxu0 %v1300_v27 }
  0x1a   :  { %1184 = vmatprep.subr.bf16.mxu1 %v1301_v28 }
  0x1c   :  { %1163 = vmatpush3.bf16.msra.mxu0 %v1302_v31 }
  0x1d   :  { %1185 = vmatpush3.bf16.msra.mxu1 %v1303_v32  ;;  %1164 = vmatprep.subr.bf16.mxu0 %v1304_v33 }
  0x1e   :  { %1186 = vmatprep.subr.bf16.mxu1 %v1305_v34 }
  0x20   :  { %1165 = vmatpush3.bf16.msra.mxu0 %v1306_v36 }
  0x21   :  { %1187 = vmatpush3.bf16.msra.mxu1 %v1307_v37  ;;  %1194 = vmatprep.subr.bf16.mxu0 %v1309_v41 }
  0x22   :  { %1216 = vmatprep.subr.bf16.mxu1 %v1310_v42 }
  0x23   :  { %653 = vmatmul.mubr.bf16.vlgmr.msra.gmra.mxu0 %v202_v44 }
  0x24   :  { %1195 = vmatpush3.bf16.msra.mxu0 %v1311_v47  ;;  %693 = vmatmul.mubr.bf16.vlgmr.msra.gmra.mxu1 %v224_v49 }
  0x25   :  { %1196 = vmatprep.subr.bf16.mxu0 %v1313_v50  ;;  %1217 = vmatpush3.bf16.msra.mxu1 %v1312_v52  ;;  %v1341_v52 = vld [vmem:[%s1701_s5 + $0x8] sm:$0xff]  }
  0x26   :  { %732 = vmatprep.mubr.bf16.mxu0 %v223_v53  ;;  %1218 = vmatprep.subr.bf16.mxu1 %v1314_v54  ;;  %v1342_v53 = vld [vmem:[%s1701_s5] sm:$0xff]   ;;  %v1343_v54 = vld [vmem:[%s1702_s7 + $0x8] sm:$0xff]  }
  0x27   :  { %772 = vmatprep.mubr.bf16.mxu1 %v227_v56 }
  0x28   :  { %1197 = vmatpush3.bf16.msra.mxu0 %v1315_v55 }
  0x29   :  { %1198 = vmatprep.subr.bf16.mxu0 %v1317_v57  ;;  %1219 = vmatpush3.bf16.msra.mxu1 %v1316_v58 }
  0x2a   :  { %1220 = vmatprep.subr.bf16.mxu1 %v1318_v59  ;;  %v1135_v59 = vld [vmem:[%s1703_s3] ss:$0 sm:$0xff] }
  0x2c   :  { %1199 = vmatpush3.bf16.msra.mxu0 %v1319_v60 }
  0x2d   :  { %1200 = vmatprep.subr.bf16.mxu0 %v1321_v61  ;;  %1221 = vmatpush3.bf16.msra.mxu1 %v1320_v62  ;;  %v1136_v61 = vld [vmem:[%s1704_s4] ss:$0 sm:$0xff] }
  0x2e   :  { %1222 = vmatprep.subr.bf16.mxu1 %v1322_v63 }
  0x30   :  { %1201 = vmatpush3.bf16.msra.mxu0 %v1323_v0 }
  0x31   :  { %1202 = vmatprep.subr.bf16.mxu0 %v1325_v1  ;;  %1223 = vmatpush3.bf16.msra.mxu1 %v1324_v2  ;;  %v1344_v1 = vld [vmem:[%s1702_s7] sm:$0xff]   ;;  %v1345_v2 = vld [vmem:[%s1705_s9 + $0x8] sm:$0xff]  }
  0x32   :  { %1224 = vmatprep.subr.bf16.mxu1 %v1326_v3  ;;  %v1137_v3 = vld [vmem:[%s1706_s6] ss:$0 sm:$0xff] }
  0x34   :  { %1203 = vmatpush3.bf16.msra.mxu0 %v1327_v4 }
  0x35   :  { %1204 = vmatprep.subr.bf16.mxu0 %v1329_v5  ;;  %1225 = vmatpush3.bf16.msra.mxu1 %v1328_v6 }
  0x36   :  { %1226 = vmatprep.subr.bf16.mxu1 %v1330_v7 }
  0x38   :  { %1205 = vmatpush3.bf16.msra.mxu0 %v1331_v8 }
  0x39   :  { %1206 = vmatprep.subr.bf16.mxu0 %v1333_v9  ;;  %1227 = vmatpush3.bf16.msra.mxu1 %v1332_v10 }
  0x3a   :  { %1228 = vmatprep.subr.bf16.mxu1 %v1334_v11  ;;  %v1346_v11 = vld [vmem:[%s1705_s9] sm:$0xff]  }
  0x3c   :  { %1207 = vmatpush3.bf16.msra.mxu0 %v1335_v12  ;;  %v1141_v12 = vld [vmem:[%s1707_s8] ss:$0 sm:$0xff] }
  0x3d   :  { %1208 = vmatprep.subr.bf16.mxu0 %v1337_v13  ;;  %1229 = vmatpush3.bf16.msra.mxu1 %v1336_v14 }
  0x3e   :  { %1230 = vmatprep.subr.bf16.mxu1 %v1338_v15 }
  0x40   :  { %1209 = vmatpush3.bf16.msra.mxu0 %v1339_v16 }
  0x41   :  { %1231 = vmatpush3.bf16.msra.mxu1 %v1340_v18  ;;  %1247 = vmatprep.subr.bf16.mxu0 %v1358_v51 }
  0x42   :  { %1255 = vmatprep.subr.bf16.mxu1 %v1358_v51 }
  0x43   :  { %733 = vmatmul.mubr.bf16.vlgmr.msra.gmra.mxu0 %v209_v17 }
  0x44   :  { %773 = vmatmul.mubr.bf16.vlgmr.msra.gmra.mxu1 %v225_v19  ;;  %1251 = vmatprep.mubr.msk.bf16.mxu0 %vm1359_vm1, %v1358_v51 }
  0x45   :  { %1259 = vmatprep.mubr.msk.bf16.mxu1 %vm1359_vm1, %v1358_v51  ;;  %1248 = vmatpush3.bf16.msra.mxu0 %v1341_v52 }
  0x46   :  { %1249 = vmatprep.subr.bf16.mxu0 %v1358_v51  ;;  %1256 = vmatpush3.bf16.msra.mxu1 %v1343_v54 }
  0x47   :  { %1257 = vmatprep.subr.bf16.mxu1 %v1358_v51 }
  0x49   :  { %1250 = vmatpush3.bf16.msra.mxu0 %v1342_v53 }
  0x4a   :  { %1263 = vmatprep.subr.bf16.mxu0 %v1358_v51  ;;  %1258 = vmatpush3.bf16.msra.mxu1 %v1344_v1 }
  0xe3   :  { %v1166_v20 = vpop.f32.mrf.mxu0 }
  0xe4   :  { %v1188_v21 = vpop.f32.mrf.mxu1 }
  0xe5   :  { %v1167_v22 = vpop.f32.mrf.mxu0 }
  0xe6   :  { %v1189_v23 = vpop.f32.mrf.mxu1  ;;  %v1168_v28 = vadd.f32 %v1167_v22, %v1166_v20  ;;  %v1145_v20 = vld [vmem:[%s1709_s10] ss:$0 sm:$0xff]  ;;  %s1360_s10 = smov 124  }
  0xe7   :  { %v1169_v24 = vpop.f32.mrf.mxu0  ;;  %v1190_v31 = vadd.f32 %v1189_v23, %v1188_v21 }
  0xe8   :  { %v1191_v25 = vpop.f32.mrf.mxu1  ;;  %v655_v30 = vadd.f32 %v1168_v28, %v1070_v29 }
  0xe9   :  { %v1170_v26 = vpop.f32.mrf.mxu0 }
  0xea   :  { %v1192_v27 = vpop.f32.mrf.mxu1  ;;  %v695_v35 = vadd.f32 %v1190_v31, %v655_v30 }
 0x103   :  { %v1210_v32 = vpop.f32.mrf.mxu0 }
 0x104   :  { %v1232_v33 = vpop.f32.mrf.mxu1 }
 0x105   :  { %v1211_v34 = vpop.f32.mrf.mxu0 }
 0x106   :  { %v1212_v36 = vadd.f32 %v1211_v34, %v1210_v32  ;;  %v1233_v37 = vpop.f32.mrf.mxu1  ;;  %v1021_v32 = vld [vmem:[%s1710_s11] sm:$0x3] }
 0x107   :  { %v1213_v38 = vpop.f32.mrf.mxu0  ;;  %v1234_v40 = vadd.f32 %v1233_v37, %v1232_v33  ;;  %v1028_v33 = vmul.f32 -0.5, %v1021_v32 }
 0x108   :  { %v735_v39 = vadd.f32 %v1212_v36, %v695_v35  ;;  %v1235_v41 = vpop.f32.mrf.mxu1 }
 0x109   :  { %v1214_v42 = vpop.f32.mrf.mxu0  ;;  %v1029_v36 = vmul.f32 %v1028_v33, %v1021_v32 }
 0x10a   :  { %v775_v43 = vadd.f32 %v1234_v40, %v735_v39  ;;  %v1236_v44 = vpop.f32.mrf.mxu1 }
 0x10c   :  { %v781_v45 = vsel %vm780_vm0, %v775_v43, 0.0 }
 0x10d   :  { %782 = vadd.xlane.f32.xlu0 %v781_v45 }
 0x196   :  { %v783_v46 = vpop.xlane.xlu0 %782 }
 0x197   :  { %v785_v47 = vmul.f32 0.03125, %v783_v46 }
 0x199   :  { %v786_v48 = vsub.f32 %v775_v43, %v785_v47 }
 0x19b   :  { %v787_v49 = vmul.f32 %v786_v48, %v786_v48 }
 0x19d   :  { %v788_v50 = vsel %vm780_vm0, %v787_v49, 0.0 }
 0x19e   :  { %789 = vadd.xlane.f32.xlu0 %v788_v50 }
 0x227   :  { %v790_v55 = vpop.xlane.xlu0 %789 }
 0x228   :  { %v791_v56 = vmul.f32 0.03125, %v790_v55 }
 0x22a   :  { %v792_v57 = vadd.f32 1e-05, %v791_v56 }
 0x22c   :  { %1347 = vrsqrt.f32 %v792_v57 }
 0x239   :  { %v1348_v58 = vpop.eup %1347 }
 0x23a   :  { %v794_v60 = vmul.f32 %v1348_v58, %v786_v48 }
 0x23c   :  { %v802_v62 = vmul.f32 %v1135_v59, %v794_v60 }
 0x23e   :  { %v810_v63 = vadd.f32 %v1136_v61, %v802_v62 }
 0x240   :  { %v811_v0 = vpack.c.bf16 %v810_v63, %v810_v63 }
 0x242   :  { %1252 = vmatmul.mubr.msk.bf16.vlgmr.msra.gmra.mxu0 %vm835_vm2, %v811_v0 }
 0x243   :  { %1267 = vmatprep.mubr.msk.bf16.mxu0 %vm1359_vm1, %v1358_v51  ;;  %1264 = vmatpush3.bf16.msra.mxu0 %v1345_v2 }
 0x244   :  { %1265 = vmatprep.subr.bf16.mxu0 %v1358_v51 }
 0x247   :  { %1266 = vmatpush3.bf16.msra.mxu0 %v1346_v11 }
 0x302   :  { %v873_v4 = vpop.f32.mrf.mxu0 }
 0x303   :  { %v874_v5 = vadd.f32 %v1137_v3, %v873_v4 }
 0x304   :  { %v1253_v6 = vpop.f32.mrf.mxu0 }
 0x305   :  { %v879_v7 = vmax.f32 %v874_v5, 0.0 }
 0x306   :  { %v876_v8 = vpop.f32.mrf.mxu0 }
 0x307   :  { %v880_v9 = vpack.c.bf16 %v879_v7, %v879_v7 }
 0x308   :  { %v1254_v10 = vpop.f32.mrf.mxu0 }
 0x309   :  { %1260 = vmatmul.mubr.msk.bf16.vlgmr.msra.gmra.mxu1 %vm835_vm2, %v880_v9 }
 0x3c9   :  { %v941_v13 = vpop.f32.mrf.mxu1 }
 0x3ca   :  { %v942_v14 = vadd.f32 %v1141_v12, %v941_v13 }
 0x3cb   :  { %v1261_v15 = vpop.f32.mrf.mxu1 }
 0x3cc   :  { %v947_v16 = vmax.f32 %v942_v14, 0.0 }
 0x3cd   :  { %v944_v17 = vpop.f32.mrf.mxu1 }
 0x3ce   :  { %v948_v18 = vpack.c.bf16 %v947_v16, %v947_v16 }
 0x3cf   :  { %v1262_v19 = vpop.f32.mrf.mxu1 }
 0x3d0   :  { %1268 = vmatmul.mubr.msk.bf16.vlgmr.msra.gmra.mxu0 %vm835_vm2, %v948_v18 }
 0x490   :  { %v1009_v21 = vpop.f32.mrf.mxu0 }
 0x491   :  { %v1010_v22 = vadd.f32 %v1145_v20, %v1009_v21 }
 0x492   :  { %v1269_v23 = vpop.f32.mrf.mxu0 }
 0x493   :  { %1349 = vtanh.f32 %v1010_v22 }
 0x494   :  { %v1012_v24 = vpop.f32.mrf.mxu0 }
 0x496   :  { %v1270_v25 = vpop.f32.mrf.mxu0 }
 0x4a0   :  { %v1350_v26 = vpop.eup %1349 }
 0x4a1   :  { %v1016_v27 = vadd.f32 1.0, %v1350_v26  ;;  %1052 = vst.msk [vmem:[%s1708_s12] sm:$0x3] %vm1035_vm3, %v1350_v26 }
 0x4a3   :  { %v1017_v28 = vmul.f32 6.0, %v1016_v27 }
 0x4a5   :  { %v1018_v29 = vadd.f32 -10.0, %v1017_v28 }
 0x4a7   :  { %v1019_v30 = vmul.f32 1.442695, %v1018_v29 }
 0x4a9   :  { %1351 = vpow2.f32 %v1019_v30 }
 0x4b6   :  { %v1352_v31 = vpop.eup %1351 }
 0x4b7   :  { %1023 = vrot.lane.b32.xlu1 %v1352_v31, %s1360_s10 }
 0x4bb   :  { %1031 = vrot.lane.b32.xlu1 %v1018_v29, %s1360_s10 }
 0x529   :  { %v1024_v34 = vpop.permute.xlu1 %1023 }
 0x52a   :  { %v1026_v35 = vmul.f32 %v1024_v34, %v1021_v32 }
 0x52c   :  { %v1027_v37 = vadd.f32 %v1026_v35, %v1010_v22 }
 0x52d   :  { %v1032_v38 = vpop.permute.xlu1 %1031 }
 0x52e   :  { %1353 = vtanh.f32 %v1027_v37  ;;  %v1034_v39 = vsub.f32 %v1029_v36, %v1032_v38 }
 0x530   :  { %v1036_v40 = vsel %vm1035_vm3, %v1034_v39, 0.0 }
 0x531   :  { %1037 = vadd.xlane.f32.xlu0 %v1036_v40 }
 0x53b   :  { %v1354_v41 = vpop.eup %1353 }
 0x53c   :  { %v1041_v42 = vmul.f32 %v1354_v41, %v1354_v41 }
 0x53e   :  { %v1042_v43 = vsub.f32 1.0, %v1041_v42 }
 0x540   :  { %v1043_v44 = vmax.f32 %v1042_v43, 0.0 }
 0x542   :  { %v1044_v45 = vadd.f32 1e-06, %v1043_v44 }
 0x544   :  { %1355 = vlog2.f32 %v1044_v45 }
 0x547   :  { %1054 = vrot.lane.b32.xlu0 %v1354_v41, %s1361_s1 }
 0x54b   :  { %1059 = vrot.lane.b32.xlu0 %v1018_v29, %s1361_s1 }
 0x551   :  { %v1356_v46 = vpop.eup %1355 }
 0x552   :  { %v1046_v47 = vmul.f32 0.6931472, %v1356_v46 }
 0x554   :  { %v1047_v48 = vsel %vm1035_vm3, %v1046_v47, 0.0 }
 0x555   :  { %1048 = vadd.xlane.f32.xlu1 %v1047_v48 }
 0x5ba   :  { %v1038_v49 = vpop.xlane.xlu0 %1037 }
 0x5bb   :  { %v1149_v52 = vadd.f32 -3.675754, %v1038_v49 }
 0x5be   :  { %v1055_v50 = vpop.permute.xlu0 %1054 }
 0x5bf   :  { %1058 = vst.msk [vmem:[%s1708_s12] sm:$0x3] %vm1057_vm4, %v1055_v50 }
 0x5c2   :  { %v1060_v51 = vpop.permute.xlu0 %1059 }
 0x5c3   :  { %1063 = vst.msk [vmem:[%s1708_s12] sm:$0x3] %vm1062_vm5, %v1060_v51 }
 0x5de   :  { %v1049_v53 = vpop.xlane.xlu1 %1048 }
 0x5df   :  { %v1050_v54 = vsub.f32 %v1149_v52, %v1049_v53 }
 0x5e1   :  { %1065 = vst.msk [vmem:[%s1708_s12] sm:$0x3] %vm1064_vm6, %v1050_v54 }

</bundles_post_ra>
